<compile_context>
chip_gen: v6e
topology: v6e:2x2x1
jax: 0.10.0
libtpu: 0.0.40
codegen_flags: <defaults>
</compile_context>

<pallas_src>
import jax
import jax.numpy as jnp
from jax.experimental import pallas as pl
from jax.experimental.pallas import tpu as pltpu


# ---------------------------------------------------------------------------
# Pallas kernel: both views fused into one step.
# ---------------------------------------------------------------------------
def _fused_forward_kernel(
    x_ref, a_ref, p_ref,                       # activations (bf16)
    w1t_ref, b1_ref, w2t_ref, b2_ref,          # GCN weights (bf16) / biases (f32)
    wa1a_ref, wa1b_ref, s1_ref, t1_ref,        # aligner L1 (split, bf16) + BN1 scale/shift (f32)
    wa2t_ref, s2_ref, t2_ref,                  # aligner L2 (bf16) + BN2 scale/shift (f32)
    z_ref,
):
    bf16 = jnp.bfloat16
    n = a_ref.shape[1]                 # nodes per view

    x = x_ref[...]                     # (2N, F)   both views' node features
    a0 = a_ref[0]                      # (N, N)    normalized adjacency, view 0
    a1 = a_ref[1]                      # (N, N)    normalized adjacency, view 1
    p = p_ref[...]                     # (2G, 2N)  block-diagonal mean-pool matrix

    # GCN layer 0: relu(A_norm @ (X @ W1^T) + b1); XW batched over both views.
    xw1 = jnp.dot(x, w1t_ref[...], preferred_element_type=jnp.float32).astype(bf16)
    h1 = jnp.concatenate(
        [jnp.dot(a0, xw1[:n], preferred_element_type=jnp.float32),
         jnp.dot(a1, xw1[n:], preferred_element_type=jnp.float32)], axis=0)
    h1 = jnp.maximum(h1 + b1_ref[...], 0.0)                       # (2N, H1) f32
    h1_bf = h1.astype(bf16)

    # GCN layer 1: relu(A_norm @ (H1 @ W2^T) + b2)
    hw2 = jnp.dot(h1_bf, w2t_ref[...], preferred_element_type=jnp.float32).astype(bf16)
    h2 = jnp.concatenate(
        [jnp.dot(a0, hw2[:n], preferred_element_type=jnp.float32),
         jnp.dot(a1, hw2[n:], preferred_element_type=jnp.float32)], axis=0)
    h2 = jnp.maximum(h2 + b2_ref[...], 0.0)                       # (2N, H2) f32
    h2_bf = h2.astype(bf16)

    # global mean pool of both layers, both views at once (block-diag pool matrix)
    g1 = jnp.dot(p, h1_bf, preferred_element_type=jnp.float32).astype(bf16)  # (2G, H1)
    g2 = jnp.dot(p, h2_bf, preferred_element_type=jnp.float32).astype(bf16)  # (2G, H2)

    # graph aligner layer 1: Linear + BatchNorm(eval) + ReLU.
    # concat([g1, g2]) @ Wa1^T == g1 @ Wa1_top + g2 @ Wa1_bot  (no in-kernel concat)
    z = (jnp.dot(g1, wa1a_ref[...], preferred_element_type=jnp.float32)
         + jnp.dot(g2, wa1b_ref[...], preferred_element_type=jnp.float32))
    z = jnp.maximum(z * s1_ref[...] + t1_ref[...], 0.0)

    # graph aligner layer 2: Linear + BatchNorm(eval) + ReLU.
    z = jnp.dot(z.astype(bf16), wa2t_ref[...], preferred_element_type=jnp.float32)
    z = jnp.maximum(z * s2_ref[...] + t2_ref[...], 0.0)

    z_ref[...] = z.astype(z_ref.dtype)


# ---------------------------------------------------------------------------
# Host-side graph preprocessing (layout plumbing, not compute).
# ---------------------------------------------------------------------------
def gcn_norm_adj(edge_index, num_nodes):
    """Dense  D^{-1/2} (A + I) D^{-1/2}  as used by PyG GCNConv."""
    src, dst = edge_index[0], edge_index[1]
    a = jnp.zeros((num_nodes, num_nodes), jnp.float32).at[dst, src].add(1.0)
    a = a + jnp.eye(num_nodes, dtype=jnp.float32)            # add_self_loops
    deg = jnp.sum(a, axis=1)
    d_inv_sqrt = jnp.where(deg > 0, 1.0 / jnp.sqrt(deg), 0.0)
    return d_inv_sqrt[:, None] * a * d_inv_sqrt[None, :]


def mean_pool_matrix(batch, num_graphs):
    """(G, N) matrix implementing global_mean_pool as a matmul."""
    onehot = (batch[None, :] ==
              jnp.arange(num_graphs, dtype=batch.dtype)[:, None]).astype(jnp.float32)
    counts = jnp.sum(onehot, axis=1, keepdims=True)
    return onehot / jnp.maximum(counts, 1.0)


def prepare_params(raw, bn_eps=1e-5):
    """Pre-transpose weights to (in,out) bf16; fold BN(eval)+bias into f32 scale/shift."""
    h1 = raw['w1'].shape[0]                    # 2*C, width of first pooled chunk
    s1 = raw['bn1_gamma'] / jnp.sqrt(raw['bn1_var'] + bn_eps)
    t1 = (raw['ba1'] - raw['bn1_mean']) * s1 + raw['bn1_beta']
    s2 = raw['bn2_gamma'] / jnp.sqrt(raw['bn2_var'] + bn_eps)
    t2 = (raw['ba2'] - raw['bn2_mean']) * s2 + raw['bn2_beta']
    wa1t = raw['wa1'].T                        # (D_emb, D_emb)
    bf = jnp.bfloat16
    return {
        'w1t': raw['w1'].T.astype(bf), 'b1': raw['b1'][None, :].astype(jnp.float32),
        'w2t': raw['w2'].T.astype(bf), 'b2': raw['b2'][None, :].astype(jnp.float32),
        'wa1a': wa1t[:h1].astype(bf), 'wa1b': wa1t[h1:].astype(bf),
        's1': s1[None, :].astype(jnp.float32), 't1': t1[None, :].astype(jnp.float32),
        'wa2t': raw['wa2'].T.astype(bf),
        's2': s2[None, :].astype(jnp.float32), 't2': t2[None, :].astype(jnp.float32),
    }


# ---------------------------------------------------------------------------
# Wrapper mirroring ObjectiveLoss_Graph.forward(batch_data, batch_data2).
# ---------------------------------------------------------------------------
def objective_loss_graph_forward(x1, edge_index1, batch1,
                                 x2, edge_index2, batch2,
                                 raw_params, num_graphs):
    # TODO(synk): both views must share node/graph counts here; ragged views would
    #             need host-side padding of x/adjacency/pool.
    N, F = x1.shape
    assert x2.shape == (N, F)
    bf = jnp.bfloat16

    # Both views' node features stacked along rows: weight-shared matmuls see 2N rows.
    x_cat = jnp.concatenate([x1, x2], axis=0).astype(bf)            # (2N, F)

    # Per-view adjacency; vmap over the view axis avoids an extra stack copy.
    if edge_index1.shape == edge_index2.shape:
        adj_pair = jax.vmap(lambda ei: gcn_norm_adj(ei, N))(
            jnp.stack([edge_index1, edge_index2]))
    else:
        adj_pair = jnp.stack([gcn_norm_adj(edge_index1, N),
                              gcn_norm_adj(edge_index2, N)])
    adj_pair = adj_pair.astype(bf)                                   # (2, N, N)

    # Block-diagonal mean-pool matrix: graph ids of view 2 offset by num_graphs.
    batch_cat = jnp.concatenate([batch1, batch2 + num_graphs])
    pool = mean_pool_matrix(batch_cat, 2 * num_graphs).astype(bf)    # (2G, 2N)

    prm = prepare_params(raw_params)
    G = num_graphs
    H1 = prm['w1t'].shape[1]
    H2 = prm['w2t'].shape[1]
    D = prm['wa2t'].shape[1]

    operands = (x_cat, adj_pair, pool,
                prm['w1t'], prm['b1'], prm['w2t'], prm['b2'],
                prm['wa1a'], prm['wa1b'], prm['s1'], prm['t1'],
                prm['wa2t'], prm['s2'], prm['t2'])

    # Footprint-aware VMEM budget, capped so it also fits v7x's 64 MiB per-TC VMEM.
    out_bytes = 2 * G * D * 4
    in_bytes = sum(int(a.size) * a.dtype.itemsize for a in operands)
    vmem_limit = int(min(max(4 * (in_bytes + out_bytes) + (8 << 20), 16 << 20),
                         48 << 20))

    N2, G2 = 2 * N, 2 * G
    flops = 2 * (N2 * F * H1 + 2 * N * N * H1
                 + N2 * H1 * H2 + 2 * N * N * H2
                 + G2 * N2 * H1 + G2 * N2 * H2
                 + G2 * H1 * D + G2 * H2 * D + G2 * D * D)
    bytes_accessed = in_bytes + out_bytes

    vmem_spec = lambda: pl.BlockSpec(memory_space=pltpu.MemorySpace.VMEM)

    z = pl.pallas_call(
        _fused_forward_kernel,
        out_shape=jax.ShapeDtypeStruct((G2, D), jnp.float32),
        in_specs=[vmem_spec() for _ in operands],
        out_specs=vmem_spec(),
        compiler_params=pltpu.CompilerParams(vmem_limit_bytes=vmem_limit),
        cost_estimate=pl.CostEstimate(
            flops=flops, transcendentals=0, bytes_accessed=bytes_accessed),
    )(*operands)

    return z[:G], z[G:]


# ---------------------------------------------------------------------------
# Pure-JAX reference mirroring the PyTorch forward (eval-mode BatchNorm), f32.
# ---------------------------------------------------------------------------
def _reference(x, edge_index, batch, raw, num_graphs, bn_eps=1e-5):
    N = x.shape[0]
    adj = gcn_norm_adj(edge_index, N)
    pool = mean_pool_matrix(batch, num_graphs)

    h1 = jax.nn.relu(adj @ (x @ raw['w1'].T) + raw['b1'])
    h2 = jax.nn.relu(adj @ (h1 @ raw['w2'].T) + raw['b2'])
    emb = jnp.concatenate([pool @ h1, pool @ h2], axis=1)

    def bn(v, g, b, m, var):
        return (v - m) / jnp.sqrt(var + bn_eps) * g + b

    z = jax.nn.relu(bn(emb @ raw['wa1'].T + raw['ba1'],
                       raw['bn1_gamma'], raw['bn1_beta'],
                       raw['bn1_mean'], raw['bn1_var']))
    z = jax.nn.relu(bn(z @ raw['wa2'].T + raw['ba2'],
                       raw['bn2_gamma'], raw['bn2_beta'],
                       raw['bn2_mean'], raw['bn2_var']))
    return z


if __name__ == "__main__":
    # Small, lane-dense shapes consistent with the module
    # (spec: in=768, C=256 -> emb=768; scaled down keeping the same structure).
    N, G = 64, 8              # 64 nodes per view, 8 graphs of 8 nodes each
    F_IN = 256                # node-feature dim
    C = 128                   # encoder out_channels
    H1, H2 = 2 * C, C         # conv0 / conv1 widths (k=2, no skip)
    D_EMB = H1 + H2           # 384 == num_hidden * num_gc_layers

    key = jax.random.PRNGKey(0)
    ks = jax.random.split(key, 24)

    def w(k, shape, scale=0.05):
        return jax.random.normal(k, shape, dtype=jnp.float32) * scale

    raw = {
        'w1': w(ks[0], (H1, F_IN)), 'b1': w(ks[1], (H1,)),
        'w2': w(ks[2], (H2, H1)),   'b2': w(ks[3], (H2,)),
        'wa1': w(ks[4], (D_EMB, D_EMB)), 'ba1': w(ks[5], (D_EMB,)),
        'wa2': w(ks[6], (D_EMB, D_EMB)), 'ba2': w(ks[7], (D_EMB,)),
        'bn1_gamma': 1.0 + 0.1 * jax.random.normal(ks[8], (D_EMB,), jnp.float32),
        'bn1_beta': 0.05 * jax.random.normal(ks[9], (D_EMB,), jnp.float32),
        'bn1_mean': 0.05 * jax.random.normal(ks[10], (D_EMB,), jnp.float32),
        'bn1_var': jax.random.uniform(ks[11], (D_EMB,), jnp.float32, 0.5, 1.5),
        'bn2_gamma': 1.0 + 0.1 * jax.random.normal(ks[12], (D_EMB,), jnp.float32),
        'bn2_beta': 0.05 * jax.random.normal(ks[13], (D_EMB,), jnp.float32),
        'bn2_mean': 0.05 * jax.random.normal(ks[14], (D_EMB,), jnp.float32),
        'bn2_var': jax.random.uniform(ks[15], (D_EMB,), jnp.float32, 0.5, 1.5),
    }

    def make_view(kx, ke, n_edges=256):
        x = jax.random.normal(kx, (N, F_IN), dtype=jnp.float32)
        src = jax.random.randint(ke, (n_edges,), 0, N, dtype=jnp.int32)
        dst = jax.random.randint(jax.random.fold_in(ke, 1), (n_edges,), 0, N,
                                 dtype=jnp.int32)
        edge_index = jnp.concatenate(
            [jnp.stack([src, dst]), jnp.stack([dst, src])], axis=1)  # undirected
        return x, edge_index

    x1, ei1 = make_view(ks[16], ks[17])
    x2, ei2 = make_view(ks[18], ks[19])
    batch = jnp.repeat(jnp.arange(G, dtype=jnp.int32), N // G)

    z1, z2 = objective_loss_graph_forward(x1, ei1, batch, x2, ei2, batch, raw, G)
    z1, z2 = jax.block_until_ready((z1, z2))

    ref1 = _reference(x1, ei1, batch, raw, G)
    ref2 = _reference(x2, ei2, batch, raw, G)

    # bf16 matmul operands with f32 accumulation -> loosened tolerance.
    assert jnp.allclose(z1, ref1, atol=5e-2, rtol=5e-2), \
        float(jnp.max(jnp.abs(z1 - ref1)))
    assert jnp.allclose(z2, ref2, atol=5e-2, rtol=5e-2), \
        float(jnp.max(jnp.abs(z2 - ref2)))

    print("KERNEL_OK")
</pallas_src>

<mosaic_0001>
module attributes {stable_mosaic.version = 11 : i64} {
  func.func @_fused_forward_kernel(%arg0: memref<128x256xbf16, #tpu.memory_space<vmem>>, %arg1: memref<2x64x64xbf16, #tpu.memory_space<vmem>>, %arg2: memref<16x128xbf16, #tpu.memory_space<vmem>>, %arg3: memref<256x256xbf16, #tpu.memory_space<vmem>>, %arg4: memref<1x256xf32, #tpu.memory_space<vmem>>, %arg5: memref<256x128xbf16, #tpu.memory_space<vmem>>, %arg6: memref<1x128xf32, #tpu.memory_space<vmem>>, %arg7: memref<256x384xbf16, #tpu.memory_space<vmem>>, %arg8: memref<128x384xbf16, #tpu.memory_space<vmem>>, %arg9: memref<1x384xf32, #tpu.memory_space<vmem>>, %arg10: memref<1x384xf32, #tpu.memory_space<vmem>>, %arg11: memref<384x384xbf16, #tpu.memory_space<vmem>>, %arg12: memref<1x384xf32, #tpu.memory_space<vmem>>, %arg13: memref<1x384xf32, #tpu.memory_space<vmem>>, %arg14: memref<16x384xf32, #tpu.memory_space<vmem>>) attributes {dimension_semantics = [], scalar_prefetch = 0 : i64, scratch_operands = 0 : i64, tpu.core_type = #tpu.core_type<tc>} {
    %c0 = arith.constant 0 : index
    %c0_0 = arith.constant 0 : index
    %0 = vector.load %arg0[%c0, %c0_0] : memref<128x256xbf16, #tpu.memory_space<vmem>>, vector<128x256xbf16>
    %c0_1 = arith.constant 0 : index
    %c0_2 = arith.constant 0 : index
    %c0_3 = arith.constant 0 : index
    %1 = vector.load %arg1[%c0_1, %c0_2, %c0_3] : memref<2x64x64xbf16, #tpu.memory_space<vmem>>, vector<1x64x64xbf16>
    %2 = vector.shape_cast %1 : vector<1x64x64xbf16> to vector<64x64xbf16>
    %c1 = arith.constant 1 : index
    %c0_4 = arith.constant 0 : index
    %c0_5 = arith.constant 0 : index
    %3 = vector.load %arg1[%c1, %c0_4, %c0_5] : memref<2x64x64xbf16, #tpu.memory_space<vmem>>, vector<1x64x64xbf16>
    %4 = vector.shape_cast %3 : vector<1x64x64xbf16> to vector<64x64xbf16>
    %c0_6 = arith.constant 0 : index
    %c0_7 = arith.constant 0 : index
    %5 = vector.load %arg2[%c0_6, %c0_7] : memref<16x128xbf16, #tpu.memory_space<vmem>>, vector<16x128xbf16>
    %c0_8 = arith.constant 0 : index
    %c0_9 = arith.constant 0 : index
    %6 = vector.load %arg3[%c0_8, %c0_9] : memref<256x256xbf16, #tpu.memory_space<vmem>>, vector<256x256xbf16>
    %cst = arith.constant dense<0.000000e+00> : vector<128x256xf32>
    %7 = tpu.matmul %0, %6, %cst {dimension_numbers = #tpu.dot_dimension_numbers<[1], [0], [0], [1], [0, 0, 1, 1], [], []>} : vector<128x256xbf16>, vector<256x256xbf16>, vector<128x256xf32> -> vector<128x256xf32>
    %8 = arith.truncf %7 : vector<128x256xf32> to vector<128x256xbf16>
    %9 = vector.extract_strided_slice %8 {offsets = [0, 0], sizes = [64, 256], strides = [1, 1]} : vector<128x256xbf16> to vector<64x256xbf16>
    %cst_10 = arith.constant dense<0.000000e+00> : vector<64x256xf32>
    %10 = tpu.matmul %2, %9, %cst_10 {dimension_numbers = #tpu.dot_dimension_numbers<[1], [0], [0], [1], [0, 0, 1, 1], [], []>} : vector<64x64xbf16>, vector<64x256xbf16>, vector<64x256xf32> -> vector<64x256xf32>
    %11 = vector.extract_strided_slice %8 {offsets = [64, 0], sizes = [64, 256], strides = [1, 1]} : vector<128x256xbf16> to vector<64x256xbf16>
    %cst_11 = arith.constant dense<0.000000e+00> : vector<64x256xf32>
    %12 = tpu.matmul %4, %11, %cst_11 {dimension_numbers = #tpu.dot_dimension_numbers<[1], [0], [0], [1], [0, 0, 1, 1], [], []>} : vector<64x64xbf16>, vector<64x256xbf16>, vector<64x256xf32> -> vector<64x256xf32>
    %13 = tpu.concatenate %10, %12 in 0 : vector<64x256xf32>, vector<64x256xf32> -> vector<128x256xf32>
    %c0_12 = arith.constant 0 : index
    %c0_13 = arith.constant 0 : index
    %14 = vector.load %arg4[%c0_12, %c0_13] : memref<1x256xf32, #tpu.memory_space<vmem>>, vector<1x256xf32>
    %15 = vector.broadcast %14 : vector<1x256xf32> to vector<128x256xf32>
    %16 = arith.addf %13, %15 : vector<128x256xf32>
    %cst_14 = arith.constant 0.000000e+00 : f32
    %17 = vector.broadcast %cst_14 : f32 to vector<128x256xf32>
    %18 = arith.maximumf %16, %17 : vector<128x256xf32>
    %19 = arith.truncf %18 : vector<128x256xf32> to vector<128x256xbf16>
    %c0_15 = arith.constant 0 : index
    %c0_16 = arith.constant 0 : index
    %20 = vector.load %arg5[%c0_15, %c0_16] : memref<256x128xbf16, #tpu.memory_space<vmem>>, vector<256x128xbf16>
    %cst_17 = arith.constant dense<0.000000e+00> : vector<128x128xf32>
    %21 = tpu.matmul %19, %20, %cst_17 {dimension_numbers = #tpu.dot_dimension_numbers<[1], [0], [0], [1], [0, 0, 1, 1], [], []>} : vector<128x256xbf16>, vector<256x128xbf16>, vector<128x128xf32> -> vector<128x128xf32>
    %22 = arith.truncf %21 : vector<128x128xf32> to vector<128x128xbf16>
    %23 = vector.extract_strided_slice %22 {offsets = [0, 0], sizes = [64, 128], strides = [1, 1]} : vector<128x128xbf16> to vector<64x128xbf16>
    %cst_18 = arith.constant dense<0.000000e+00> : vector<64x128xf32>
    %24 = tpu.matmul %2, %23, %cst_18 {dimension_numbers = #tpu.dot_dimension_numbers<[1], [0], [0], [1], [0, 0, 1, 1], [], []>} : vector<64x64xbf16>, vector<64x128xbf16>, vector<64x128xf32> -> vector<64x128xf32>
    %25 = vector.extract_strided_slice %22 {offsets = [64, 0], sizes = [64, 128], strides = [1, 1]} : vector<128x128xbf16> to vector<64x128xbf16>
    %cst_19 = arith.constant dense<0.000000e+00> : vector<64x128xf32>
    %26 = tpu.matmul %4, %25, %cst_19 {dimension_numbers = #tpu.dot_dimension_numbers<[1], [0], [0], [1], [0, 0, 1, 1], [], []>} : vector<64x64xbf16>, vector<64x128xbf16>, vector<64x128xf32> -> vector<64x128xf32>
    %27 = tpu.concatenate %24, %26 in 0 : vector<64x128xf32>, vector<64x128xf32> -> vector<128x128xf32>
    %c0_20 = arith.constant 0 : index
    %c0_21 = arith.constant 0 : index
    %28 = vector.load %arg6[%c0_20, %c0_21] : memref<1x128xf32, #tpu.memory_space<vmem>>, vector<1x128xf32>
    %29 = vector.broadcast %28 : vector<1x128xf32> to vector<128x128xf32>
    %30 = arith.addf %27, %29 : vector<128x128xf32>
    %cst_22 = arith.constant 0.000000e+00 : f32
    %31 = vector.broadcast %cst_22 : f32 to vector<128x128xf32>
    %32 = arith.maximumf %30, %31 : vector<128x128xf32>
    %33 = arith.truncf %32 : vector<128x128xf32> to vector<128x128xbf16>
    %cst_23 = arith.constant dense<0.000000e+00> : vector<16x256xf32>
    %34 = tpu.matmul %5, %19, %cst_23 {dimension_numbers = #tpu.dot_dimension_numbers<[1], [0], [0], [1], [0, 0, 1, 1], [], []>} : vector<16x128xbf16>, vector<128x256xbf16>, vector<16x256xf32> -> vector<16x256xf32>
    %35 = arith.truncf %34 : vector<16x256xf32> to vector<16x256xbf16>
    %cst_24 = arith.constant dense<0.000000e+00> : vector<16x128xf32>
    %36 = tpu.matmul %5, %33, %cst_24 {dimension_numbers = #tpu.dot_dimension_numbers<[1], [0], [0], [1], [0, 0, 1, 1], [], []>} : vector<16x128xbf16>, vector<128x128xbf16>, vector<16x128xf32> -> vector<16x128xf32>
    %37 = arith.truncf %36 : vector<16x128xf32> to vector<16x128xbf16>
    %c0_25 = arith.constant 0 : index
    %c0_26 = arith.constant 0 : index
    %38 = vector.load %arg7[%c0_25, %c0_26] : memref<256x384xbf16, #tpu.memory_space<vmem>>, vector<256x384xbf16>
    %cst_27 = arith.constant dense<0.000000e+00> : vector<16x384xf32>
    %39 = tpu.matmul %35, %38, %cst_27 {dimension_numbers = #tpu.dot_dimension_numbers<[1], [0], [0], [1], [0, 0, 1, 1], [], []>} : vector<16x256xbf16>, vector<256x384xbf16>, vector<16x384xf32> -> vector<16x384xf32>
    %c0_28 = arith.constant 0 : index
    %c0_29 = arith.constant 0 : index
    %40 = vector.load %arg8[%c0_28, %c0_29] : memref<128x384xbf16, #tpu.memory_space<vmem>>, vector<128x384xbf16>
    %cst_30 = arith.constant dense<0.000000e+00> : vector<16x384xf32>
    %41 = tpu.matmul %37, %40, %cst_30 {dimension_numbers = #tpu.dot_dimension_numbers<[1], [0], [0], [1], [0, 0, 1, 1], [], []>} : vector<16x128xbf16>, vector<128x384xbf16>, vector<16x384xf32> -> vector<16x384xf32>
    %42 = arith.addf %39, %41 : vector<16x384xf32>
    %c0_31 = arith.constant 0 : index
    %c0_32 = arith.constant 0 : index
    %43 = vector.load %arg9[%c0_31, %c0_32] : memref<1x384xf32, #tpu.memory_space<vmem>>, vector<1x384xf32>
    %44 = vector.broadcast %43 : vector<1x384xf32> to vector<16x384xf32>
    %45 = arith.mulf %42, %44 : vector<16x384xf32>
    %c0_33 = arith.constant 0 : index
    %c0_34 = arith.constant 0 : index
    %46 = vector.load %arg10[%c0_33, %c0_34] : memref<1x384xf32, #tpu.memory_space<vmem>>, vector<1x384xf32>
    %47 = vector.broadcast %46 : vector<1x384xf32> to vector<16x384xf32>
    %48 = arith.addf %45, %47 : vector<16x384xf32>
    %cst_35 = arith.constant 0.000000e+00 : f32
    %49 = vector.broadcast %cst_35 : f32 to vector<16x384xf32>
    %50 = arith.maximumf %48, %49 : vector<16x384xf32>
    %51 = arith.truncf %50 : vector<16x384xf32> to vector<16x384xbf16>
    %c0_36 = arith.constant 0 : index
    %c0_37 = arith.constant 0 : index
    %52 = vector.load %arg11[%c0_36, %c0_37] : memref<384x384xbf16, #tpu.memory_space<vmem>>, vector<384x384xbf16>
    %cst_38 = arith.constant dense<0.000000e+00> : vector<16x384xf32>
    %53 = tpu.matmul %51, %52, %cst_38 {dimension_numbers = #tpu.dot_dimension_numbers<[1], [0], [0], [1], [0, 0, 1, 1], [], []>} : vector<16x384xbf16>, vector<384x384xbf16>, vector<16x384xf32> -> vector<16x384xf32>
    %c0_39 = arith.constant 0 : index
    %c0_40 = arith.constant 0 : index
    %54 = vector.load %arg12[%c0_39, %c0_40] : memref<1x384xf32, #tpu.memory_space<vmem>>, vector<1x384xf32>
    %55 = vector.broadcast %54 : vector<1x384xf32> to vector<16x384xf32>
    %56 = arith.mulf %53, %55 : vector<16x384xf32>
    %c0_41 = arith.constant 0 : index
    %c0_42 = arith.constant 0 : index
    %57 = vector.load %arg13[%c0_41, %c0_42] : memref<1x384xf32, #tpu.memory_space<vmem>>, vector<1x384xf32>
    %58 = vector.broadcast %57 : vector<1x384xf32> to vector<16x384xf32>
    %59 = arith.addf %56, %58 : vector<16x384xf32>
    %cst_43 = arith.constant 0.000000e+00 : f32
    %60 = vector.broadcast %cst_43 : f32 to vector<16x384xf32>
    %61 = arith.maximumf %59, %60 : vector<16x384xf32>
    %c0_44 = arith.constant 0 : index
    %c0_45 = arith.constant 0 : index
    %62 = vector.load %arg14[%c0_44, %c0_45] : memref<16x384xf32, #tpu.memory_space<vmem>>, vector<16x384xf32>
    tpu.vector_store %arg14[%c0_44, %c0_45], %61 {strides = array<i32>} : memref<16x384xf32, #tpu.memory_space<vmem>>, vector<16x384xf32>,
    return
  }
}

</mosaic_0001>

<bundles_post_ra>
// kernel: tpu_custom_call.1
= control target key start
LH: loop header
LB: loop body
LE: loop exit
PB: predicated region body
PF: predicated region fallthrough
CT: control target
= control target key end

     0   :  { %19 = vsyncpa [#allocation3], 0  ;;  %s4234_s0 = inlined_call_operand.hbm [shape: bf16[128,256], index: 0, kind: input, shape index: {}]   ;;  %s4235_s1 = inlined_call_operand.hbm [shape: bf16[2,64,64], index: 1, kind: input, shape index: {}]   ;;  %s4236_s2 = inlined_call_operand.hbm [shape: bf16[16,128], index: 2, kind: input, shape index: {}]   ;;  %s4237_s3 = inlined_call_operand.hbm [shape: bf16[256,256], index: 3, kind: input, shape index: {}]   ;;  %s4238_s4 = inlined_call_operand.hbm [shape: f32[1,256], index: 4, kind: input, shape index: {}]   ;;  %s4239_s5 = inlined_call_operand.hbm [shape: bf16[256,128], index: 5, kind: input, shape index: {}]   ;;  %s4240_s6 = inlined_call_operand.hbm [shape: f32[1,128], index: 6, kind: input, shape index: {}]   ;;  %s4241_s7 = inlined_call_operand.hbm [shape: bf16[256,384], index: 7, kind: input, shape index: {}]   ;;  %s4242_s8 = inlined_call_operand.hbm [shape: bf16[128,384], index: 8, kind: input, shape index: {}]   ;;  %s4243_s9 = inlined_call_operand.vmem [shape: f32[1,384], index: 9, kind: input, shape index: {}]   ;;  %s4244_s10 = inlined_call_operand.vmem [shape: f32[1,384], index: 10, kind: input, shape index: {}]   ;;  %s4245_s11 = inlined_call_operand.hbm [shape: bf16[384,384], index: 11, kind: input, shape index: {}]   ;;  %s4246_s12 = inlined_call_operand.vmem [shape: f32[1,384], index: 12, kind: input, shape index: {}]   ;;  %s4247_s13 = inlined_call_operand.vmem [shape: f32[1,384], index: 13, kind: input, shape index: {}]   ;;  %s4248_s14 = inlined_call_operand.hbm [shape: f32[16,384], index: 14, kind: output, shape index: {}]  }
   0x1   :  { %20 = vsyncpa [#allocation6], 0 }
   0x2   :  { %21 = vsyncpa [#allocation9], 0 }
   0x3   :  { %22 = vsyncpa [#allocation12], 0 }
   0x4   :  { %23 = vsyncpa [#allocation15], 0 }
   0x5   :  { %24 = vsyncpa [#allocation18], 0 }
   0x6   :  { %25 = vsyncpa [#allocation4], 0  ;;  %s3876_s29 = smov [#allocation5]  }
   0x7   :  { %s43_s30 = sshll.u32 %s3876_s29, 4  ;;  %s44_s30 = int_to_ptr.vmem [resolvable:$true] %s43_s30 }
   0x8   :  { %s3650_s15 = scalar_lea.vmem %s44_s30, 1024  ;;  %p3655_p1 = scmp.lt.s32.totalorder %s44_s30, %s44_s30 }
   0x9   :  { %p3651_p0 = scmp.ne.s32.totalorder %s44_s30, %s3650_s15  ;;  %p3656_p2 = scmp.lt.s32.totalorder %s3650_s15, %s3650_s15 }
   0xb   :  { %p3657_p3 = por %p3656_p2, %p3655_p1 }
   0xd   :  { %p3658_p4 = pnand %p3657_p3, %p3651_p0 }
   0xf   :  { %3661 = shalt.err (!%p3658_p4)
}
  0x10   :  { %s3877_s16 = smov 64   ;;  %s3878_s17 = smov 4  }
  0x11   :  { %49 = dma.hbm_to_vmem [thread:$0]  %s4235_s1, 1024, %s44_s30, [#allocation6], %s3877_s16, %s3877_s16, %s3878_s17  }
  0x12   :  { %s3879_s20 = smov [#allocation8]   ;;  %s3880_s22 = smov [#allocation11]  }
  0x13   :  { %s67_s21 = sshll.u32 %s3879_s20, 4  ;;  %s89_s23 = sshll.u32 %s3880_s22, 4  ;;  %s68_s21 = int_to_ptr.vmem [resolvable:$true] %s67_s21  ;;  %s90_s23 = int_to_ptr.vmem [resolvable:$true] %s89_s23 }
  0x14   :  { %s3670_s24 = scalar_lea.vmem %s68_s21, 4096  ;;  %p3675_p6 = scmp.lt.s32.totalorder %s68_s21, %s68_s21 }
  0x15   :  { %p3671_p5 = scmp.ne.s32.totalorder %s68_s21, %s3670_s24  ;;  %p3676_p7 = scmp.lt.s32.totalorder %s3670_s24, %s3670_s24 }
  0x17   :  { %p3677_p8 = por %p3676_p7, %p3675_p6 }
  0x19   :  { %p3678_p9 = pnand %p3677_p8, %p3671_p5 }
  0x1b   :  { %3681 = shalt.err (!%p3678_p9)
}
  0x1c   :  { %s3881_s25 = smov 128   ;;  %s3882_s26 = smov 8  }
  0x1d   :  { %73 = dma.hbm_to_vmem [thread:$0]  %s4237_s3, 4096, %s68_s21, [#allocation9], %s3881_s25, %s3881_s25, %s3882_s26  }
  0x1e   :  { %s3690_s1 = scalar_lea.vmem %s90_s23, 2048  ;;  %p3695_p11 = scmp.lt.s32.totalorder %s90_s23, %s90_s23 }
  0x1f   :  { %p3691_p10 = scmp.ne.s32.totalorder %s90_s23, %s3690_s1  ;;  %p3696_p12 = scmp.lt.s32.totalorder %s3690_s1, %s3690_s1 }
  0x21   :  { %p3697_p13 = por %p3696_p12, %p3695_p11 }
  0x23   :  { %p3698_p0 = pnand %p3697_p13, %p3691_p10 }
  0x25   :  { %3701 = shalt.err (!%p3698_p0)
}
  0x26   :  { %95 = dma.hbm_to_vmem [thread:$0]  %s4239_s5, 2048, %s90_s23, [#allocation12], %s3877_s16, %s3877_s16, %s3878_s17  }
  0x27   :  { %s3883_s15 = smov [#allocation14]  }
  0x28   :  { %s111_s18 = sshll.u32 %s3883_s15, 4  ;;  %s112_s18 = int_to_ptr.vmem [resolvable:$true] %s111_s18 }
  0x29   :  { %s3710_s19 = scalar_lea.vmem %s112_s18, 6144  ;;  %p3715_p2 = scmp.lt.s32.totalorder %s112_s18, %s112_s18 }
  0x2a   :  { %p3711_p1 = scmp.ne.s32.totalorder %s112_s18, %s3710_s19  ;;  %p3716_p3 = scmp.lt.s32.totalorder %s3710_s19, %s3710_s19 }
  0x2c   :  { %p3717_p4 = por %p3716_p3, %p3715_p2 }
  0x2e   :  { %p3718_p5 = pnand %p3717_p4, %p3711_p1 }
  0x30   :  { %3721 = shalt.err (!%p3718_p5)
}
  0x31   :  { %s3884_s3 = smov 192   ;;  %s3885_s20 = smov 12  }
  0x32   :  { %117 = dma.hbm_to_vmem [thread:$0]  %s4241_s7, 6144, %s112_s18, [#allocation15], %s3884_s3, %s3884_s3, %s3885_s20  }
  0x33   :  { %s3886_s5 = smov [#allocation2]   ;;  %s3887_s24 = smov [#allocation7]  }
  0x34   :  { %s31_s23 = sshll.u32 %s3886_s5, 4  ;;  %s55_s27 = sshll.u32 %s3887_s24, 4  ;;  %s32_s23 = int_to_ptr.vmem [resolvable:$true] %s31_s23  ;;  %s56_s27 = int_to_ptr.vmem [resolvable:$true] %s55_s27 }
  0x35   :  { %s3730_s28 = scalar_lea.vmem %s32_s23, 2048  ;;  %p3735_p7 = scmp.lt.s32.totalorder %s32_s23, %s32_s23 }
  0x36   :  { %p3731_p6 = scmp.ne.s32.totalorder %s32_s23, %s3730_s28  ;;  %p3736_p8 = scmp.lt.s32.totalorder %s3730_s28, %s3730_s28 }
  0x38   :  { %p3737_p9 = por %p3736_p8, %p3735_p7 }
  0x3a   :  { %p3738_p10 = pnand %p3737_p9, %p3731_p6 }
  0x3c   :  { %3741 = shalt.err (!%p3738_p10)
}
  0x3d   :  { %37 = dma.hbm_to_vmem [thread:$0]  %s4234_s0, 2048, %s32_s23, [#allocation3], %s3881_s25, %s3881_s25, %s3882_s26  }
  0x3e   :  { %s3750_s7 = scalar_lea.vmem %s56_s27, 128  ;;  %p3755_p12 = scmp.lt.s32.totalorder %s56_s27, %s56_s27 }
  0x3f   :  { %p3751_p11 = scmp.ne.s32.totalorder %s56_s27, %s3750_s7  ;;  %p3756_p13 = scmp.lt.s32.totalorder %s3750_s7, %s3750_s7 }
  0x41   :  { %p3757_p0 = por %p3756_p13, %p3755_p12 }
  0x43   :  { %p3758_p1 = pnand %p3757_p0, %p3751_p11 }
  0x45   :  { %3761 = shalt.err (!%p3758_p1)
}
  0x46   :  { %61 = dma.hbm_to_vmem [thread:$0]  %s4236_s2, 128, %s56_s27, [#allocation6], %s3877_s16, %s3877_s16, %s3878_s17  }
  0x47   :  { %s3888_s18 = smov [#allocation10]   ;;  %s3889_s21 = smov [#allocation13]  }
  0x48   :  { %s80_s19 = sshll.u32 %s3888_s18, 4  ;;  %s102_s22 = sshll.u32 %s3889_s21, 4  ;;  %s81_s19 = int_to_ptr.vmem [resolvable:$true] %s80_s19  ;;  %s103_s22 = int_to_ptr.vmem [resolvable:$true] %s102_s22 }
  0x49   :  { %s3770_s0 = scalar_lea.vmem %s81_s19, 32  ;;  %p3775_p3 = scmp.lt.s32.totalorder %s81_s19, %s81_s19 }
  0x4a   :  { %p3771_p2 = scmp.ne.s32.totalorder %s81_s19, %s3770_s0  ;;  %p3776_p4 = scmp.lt.s32.totalorder %s3770_s0, %s3770_s0 }
  0x4c   :  { %p3777_p5 = por %p3776_p4, %p3775_p3 }
  0x4e   :  { %p3778_p6 = pnand %p3777_p5, %p3771_p2 }
  0x50   :  { %3781 = shalt.err (!%p3778_p6)
}
  0x51   :  { %83 = dma.hbm_to_vmem [thread:$0]  %s4238_s4, 32, %s81_s19, [#allocation9]  }
  0x52   :  { %s3790_s5 = scalar_lea.vmem %s103_s22, 16  ;;  %s3794_s2 = scalar_lea.vmem %s103_s22, 32 }
  0x53   :  { %p3791_p7 = scmp.ne.s32.totalorder %s103_s22, %s3790_s5  ;;  %p3795_p8 = scmp.lt.s32.totalorder %s103_s22, %s103_s22 }
  0x54   :  { %p3796_p9 = scmp.lt.s32.totalorder %s3794_s2, %s3790_s5 }
  0x56   :  { %p3797_p10 = por %p3796_p9, %p3795_p8 }
  0x58   :  { %p3798_p11 = pnand %p3797_p10, %p3791_p7 }
  0x5a   :  { %3801 = shalt.err (!%p3798_p11)
}
  0x5b   :  { %105 = dma.hbm_to_vmem [thread:$0]  %s4240_s6, 16, %s103_s22, [#allocation12]  }
  0x5c   :  { %s3890_s23 = smov [#allocation16]   ;;  %s3891_s27 = smov [#allocation17]  }
  0x5d   :  { %s123_s24 = sshll.u32 %s3890_s23, 4  ;;  %s139_s28 = sshll.u32 %s3891_s27, 4  ;;  %s124_s24 = int_to_ptr.vmem [resolvable:$true] %s123_s24  ;;  %s140_s28 = int_to_ptr.vmem [resolvable:$true] %s139_s28 }
  0x5e   :  { %s3810_s1 = scalar_lea.vmem %s124_s24, 3072  ;;  %p3815_p13 = scmp.lt.s32.totalorder %s124_s24, %s124_s24 }
  0x5f   :  { %p3811_p12 = scmp.ne.s32.totalorder %s124_s24, %s3810_s1  ;;  %p3816_p0 = scmp.lt.s32.totalorder %s3810_s1, %s3810_s1 }
  0x61   :  { %p3817_p1 = por %p3816_p0, %p3815_p13 }
  0x63   :  { %p3818_p2 = pnand %p3817_p1, %p3811_p12 }
  0x65   :  { %3821 = shalt.err (!%p3818_p2)
}
  0x66   :  { %129 = dma.hbm_to_vmem [thread:$0]  %s4242_s8, 3072, %s124_s24, [#allocation15], %s3884_s3, %s3884_s3, %s3885_s20  }
  0x67   :  { %s3830_s6 = scalar_lea.vmem %s140_s28, 9216  ;;  %p3835_p4 = scmp.lt.s32.totalorder %s140_s28, %s140_s28 }
  0x68   :  { %p3831_p3 = scmp.ne.s32.totalorder %s140_s28, %s3830_s6  ;;  %p3836_p5 = scmp.lt.s32.totalorder %s3830_s6, %s3830_s6 }
  0x6a   :  { %p3837_p6 = por %p3836_p5, %p3835_p4 }
  0x6c   :  { %p3838_p7 = pnand %p3837_p6, %p3831_p3 }
  0x6e   :  { %3841 = shalt.err (!%p3838_p7)
}
  0x6f   :  { %145 = dma.hbm_to_vmem [thread:$0]  %s4245_s11, 9216, %s140_s28, [#allocation18], %s3884_s3, %s3884_s3, %s3885_s20  }
  0x70   :  { %3862 = dma.done.wait [#allocation3], 2048  }
  0x71   :  { %3863 = vsyncadd [#allocation3], 4294965248 }
  0x72   :  { %3864 = dma.done.wait [#allocation6], 1152  }
  0x73   :  { %3865 = vsyncadd [#allocation6], 4294966144 }
  0x74   :  { %3866 = dma.done.wait [#allocation9], 4128  }
  0x75   :  { %3867 = vsyncadd [#allocation9], 4294963168 }
  0x76   :  { %3868 = dma.done.wait [#allocation12], 2064  }
  0x77   :  { %3869 = vsyncadd [#allocation12], 4294965232 }
  0x78   :  { %3870 = dma.done.wait [#allocation15], 9216  }
  0x79   :  { %3871 = vsyncadd [#allocation15], 4294958080 }
  0x7a   :  { %3872 = dma.done.wait [#allocation18], 9216  }
  0x7b   :  { %3873 = vsyncadd [#allocation18], 4294958080  ;;  %v3353_v0 = vld [vmem:[#allocation8 + $0x74] ss:$8 sps:$4 sm:$0xff]   ;;  %v3355_v1 = vld [vmem:[#allocation8 + $0x70] ss:$8 sps:$4 sm:$0xff]  }
  0x7c   :  { %488 = vmatprep.subr.bf16.mxu0 %v3353_v0  ;;  %v3356_v2 = vld [vmem:[#allocation8 + $0x64] ss:$8 sps:$4 sm:$0xff]   ;;  %v3358_v3 = vld [vmem:[#allocation8 + $0x60] ss:$8 sps:$4 sm:$0xff]   ;;  %v3359_v4 = vld [vmem:[#allocation8 + $0x54] ss:$8 sps:$4 sm:$0xff]  }
  0x7d   :  { %489 = vmatpush1.bf16.msra.mxu0 %v3355_v1  ;;  %v3361_v5 = vld [vmem:[#allocation8 + $0x50] ss:$8 sps:$4 sm:$0xff]   ;;  %v3362_v6 = vld [vmem:[#allocation8 + $0x44] ss:$8 sps:$4 sm:$0xff]   ;;  %v3364_v7 = vld [vmem:[#allocation8 + $0x40] ss:$8 sps:$4 sm:$0xff]  }
  0x7e   :  { %490 = vmatprep.subr.bf16.mxu0 %v3356_v2  ;;  %v3365_v8 = vld [vmem:[#allocation8 + $0x34] ss:$8 sps:$4 sm:$0xff]   ;;  %v3367_v9 = vld [vmem:[#allocation8 + $0x30] ss:$8 sps:$4 sm:$0xff]   ;;  %v3368_v10 = vld [vmem:[#allocation8 + $0x24] ss:$8 sps:$4 sm:$0xff]  }
  0x7f   :  { %v3370_v11 = vld [vmem:[#allocation8 + $0x20] ss:$8 sps:$4 sm:$0xff]   ;;  %v3371_v12 = vld [vmem:[#allocation8 + $0x14] ss:$8 sps:$4 sm:$0xff]   ;;  %v3373_v14 = vld [vmem:[#allocation8 + $0x10] ss:$8 sps:$4 sm:$0xff]  }
  0x80   :  { %v3403_v13 = vld [vmem:[#allocation2 + $0x4] ss:$8 sps:$4 sm:$0xff]   ;;  %v3376_v16 = vld [vmem:[#allocation8] ss:$8 sps:$4 sm:$0xff]   ;;  %v3379_v18 = vld [vmem:[#allocation8 + $0xf0] ss:$8 sps:$4 sm:$0xff]  }
  0x81   :  { %491 = vmatpush1.bf16.msra.mxu0 %v3358_v3  ;;  %v3374_v15 = vld [vmem:[#allocation8 + $0x4] ss:$8 sps:$4 sm:$0xff]   ;;  %520 = vmatprep.mubr.bf16.mxu0 %v3403_v13  ;;  %v3377_v17 = vld [vmem:[#allocation8 + $0xf4] ss:$8 sps:$4 sm:$0xff]   ;;  %v3382_v20 = vld [vmem:[#allocation8 + $0xe0] ss:$8 sps:$4 sm:$0xff]  }
  0x82   :  { %492 = vmatprep.subr.bf16.mxu0 %v3359_v4  ;;  %v3380_v19 = vld [vmem:[#allocation8 + $0xe4] ss:$8 sps:$4 sm:$0xff]   ;;  %v3383_v21 = vld [vmem:[#allocation8 + $0xd4] ss:$8 sps:$4 sm:$0xff]   ;;  %v3385_v22 = vld [vmem:[#allocation8 + $0xd0] ss:$8 sps:$4 sm:$0xff]  }
  0x83   :  { %v3386_v23 = vld [vmem:[#allocation8 + $0xc4] ss:$8 sps:$4 sm:$0xff]   ;;  %v3388_v24 = vld [vmem:[#allocation8 + $0xc0] ss:$8 sps:$4 sm:$0xff]   ;;  %v3389_v25 = vld [vmem:[#allocation8 + $0xb4] ss:$8 sps:$4 sm:$0xff]  }
  0x84   :  { %v3391_v26 = vld [vmem:[#allocation8 + $0xb0] ss:$8 sps:$4 sm:$0xff]   ;;  %v3392_v27 = vld [vmem:[#allocation8 + $0xa4] ss:$8 sps:$4 sm:$0xff]   ;;  %v3394_v28 = vld [vmem:[#allocation8 + $0xa0] ss:$8 sps:$4 sm:$0xff]  }
  0x85   :  { %493 = vmatpush1.bf16.msra.mxu0 %v3361_v5  ;;  %v3395_v29 = vld [vmem:[#allocation8 + $0x94] ss:$8 sps:$4 sm:$0xff]   ;;  %v3397_v30 = vld [vmem:[#allocation8 + $0x90] ss:$8 sps:$4 sm:$0xff]   ;;  %v3398_v31 = vld [vmem:[#allocation8 + $0x84] ss:$8 sps:$4 sm:$0xff]  }
  0x86   :  { %494 = vmatprep.subr.bf16.mxu0 %v3362_v6  ;;  %v3400_v32 = vld [vmem:[#allocation8 + $0x80] ss:$8 sps:$4 sm:$0xff]   ;;  %v3404_v34 = vld [vmem:[#allocation2 + $0x14] ss:$8 sps:$4 sm:$0xff]   ;;  %v3407_v36 = vld [vmem:[#allocation2 + $0x24] ss:$8 sps:$4 sm:$0xff]  }
  0x87   :  { %v3401_v33 = vld [vmem:[#allocation2] ss:$8 sps:$4 sm:$0xff]   ;;  %v3406_v35 = vld [vmem:[#allocation2 + $0x10] ss:$8 sps:$4 sm:$0xff]   ;;  %v3410_v38 = vld [vmem:[#allocation2 + $0x34] ss:$8 sps:$4 sm:$0xff]  }
  0x88   :  { %v3409_v37 = vld [vmem:[#allocation2 + $0x20] ss:$8 sps:$4 sm:$0xff]   ;;  %v3412_v39 = vld [vmem:[#allocation2 + $0x30] ss:$8 sps:$4 sm:$0xff]   ;;  %v3413_v40 = vld [vmem:[#allocation2 + $0x44] ss:$8 sps:$4 sm:$0xff]  }
  0x89   :  { %495 = vmatpush1.bf16.msra.mxu0 %v3364_v7  ;;  %v3415_v41 = vld [vmem:[#allocation2 + $0x40] ss:$8 sps:$4 sm:$0xff]   ;;  %v3416_v42 = vld [vmem:[#allocation2 + $0x54] ss:$8 sps:$4 sm:$0xff]   ;;  %v3418_v43 = vld [vmem:[#allocation2 + $0x50] ss:$8 sps:$4 sm:$0xff]  }
  0x8a   :  { %496 = vmatprep.subr.bf16.mxu0 %v3365_v8  ;;  %v3419_v44 = vld [vmem:[#allocation2 + $0x64] ss:$8 sps:$4 sm:$0xff]   ;;  %v3421_v45 = vld [vmem:[#allocation2 + $0x60] ss:$8 sps:$4 sm:$0xff]   ;;  %v3422_v46 = vld [vmem:[#allocation2 + $0x74] ss:$8 sps:$4 sm:$0xff]  }
  0x8b   :  { %v3424_v47 = vld [vmem:[#allocation2 + $0x70] ss:$8 sps:$4 sm:$0xff]   ;;  %v3425_v48 = vld [vmem:[#allocation5] sm:$0xff]   ;;  %v3892_v49 = vmov 0   ;;  %vm637_vm0 = vcmask 523264   ;;  %vm3894_vm1 = vmmov 0  }
  0x8c   :  { %682 = vmatprep.mubr.bf16.mxu1 %v3892_v49 }
  0x8d   :  { %497 = vmatpush1.bf16.msra.mxu0 %v3367_v9 }
  0x8e   :  { %498 = vmatprep.subr.bf16.mxu0 %v3368_v10 }
  0x91   :  { %499 = vmatpush1.bf16.msra.mxu0 %v3370_v11 }
  0x92   :  { %500 = vmatprep.subr.bf16.mxu0 %v3371_v12 }
  0x95   :  { %501 = vmatpush1.bf16.msra.mxu0 %v3373_v14 }
  0x96   :  { %502 = vmatprep.subr.bf16.mxu0 %v3374_v15 }
  0x99   :  { %503 = vmatpush1.bf16.msra.mxu0 %v3376_v16 }
  0x9a   :  { %504 = vmatprep.subr.bf16.mxu0 %v3377_v17 }
  0x9d   :  { %505 = vmatpush2.bf16.msra.mxu0 %v3379_v18 }
  0x9e   :  { %506 = vmatprep.subr.bf16.mxu0 %v3380_v19 }
  0xa1   :  { %507 = vmatpush2.bf16.msra.mxu0 %v3382_v20 }
  0xa2   :  { %508 = vmatprep.subr.bf16.mxu0 %v3383_v21  ;;  %v4031_v21 = vld [vmem:[#allocation5 + $0x8] sm:$0xff]  }
  0xa5   :  { %509 = vmatpush2.bf16.msra.mxu0 %v3385_v22 }
  0xa6   :  { %510 = vmatprep.subr.bf16.mxu0 %v3386_v23 }
  0xa9   :  { %511 = vmatpush2.bf16.msra.mxu0 %v3388_v24 }
  0xaa   :  { %512 = vmatprep.subr.bf16.mxu0 %v3389_v25 }
  0xad   :  { %513 = vmatpush2.bf16.msra.mxu0 %v3391_v26  ;;  %v4036_v26 = vld [vmem:[#allocation5 + $0x10] sm:$0xff]  }
  0xae   :  { %514 = vmatprep.subr.bf16.mxu0 %v3392_v27 }
  0xb1   :  { %515 = vmatpush2.bf16.msra.mxu0 %v3394_v28 }
  0xb2   :  { %516 = vmatprep.subr.bf16.mxu0 %v3395_v29 }
  0xb5   :  { %517 = vmatpush2.bf16.msra.mxu0 %v3397_v30 }
  0xb6   :  { %518 = vmatprep.subr.bf16.mxu0 %v3398_v31 }
  0xb9   :  { %519 = vmatpush2.bf16.msra.mxu0 %v3400_v32 }
  0xbc   :  { %521 = vmatmul.mubr.bf16.vlgmr.msra.gmra.mxu0 %v3401_v33  ;;  %v4041_v33 = vld [vmem:[#allocation5 + $0x18] sm:$0xff]  }
  0xbd   :  { %530 = vmatprep.mubr.bf16.mxu0 %v3404_v34 }
  0xc4   :  { %531 = vmatmul.mubr.bf16.gmra.mxu0 %v3406_v35 }
  0xc5   :  { %540 = vmatprep.mubr.bf16.mxu0 %v3407_v36  ;;  %v3433_v36 = vld [vmem:[#allocation11 + $0x78] sm:$0xff]  }
  0xcc   :  { %541 = vmatmul.mubr.bf16.gmra.mxu0 %v3409_v37 }
  0xcd   :  { %550 = vmatprep.mubr.bf16.mxu0 %v3410_v38  ;;  %v4046_v38 = vld [vmem:[#allocation5 + $0x20] sm:$0xff]  }
  0xd4   :  { %551 = vmatmul.mubr.bf16.gmra.mxu0 %v3412_v39  ;;  %v3434_v39 = vld [vmem:[#allocation11 + $0x38] sm:$0xff]  }
  0xd5   :  { %560 = vmatprep.mubr.bf16.mxu0 %v3413_v40  ;;  %v3435_v40 = vld [vmem:[#allocation11 + $0x70] sm:$0xff]  }
  0xdc   :  { %561 = vmatmul.mubr.bf16.gmra.mxu0 %v3415_v41  ;;  %v3436_v41 = vld [vmem:[#allocation11 + $0x30] sm:$0xff]  }
  0xdd   :  { %570 = vmatprep.mubr.bf16.mxu0 %v3416_v42  ;;  %v3437_v42 = vld [vmem:[#allocation11 + $0x68] sm:$0xff]  }
  0xe4   :  { %571 = vmatmul.mubr.bf16.gmra.mxu0 %v3418_v43  ;;  %v4051_v43 = vld [vmem:[#allocation5 + $0x28] sm:$0xff]  }
  0xe5   :  { %580 = vmatprep.mubr.bf16.mxu0 %v3419_v44  ;;  %v3438_v44 = vld [vmem:[#allocation11 + $0x28] sm:$0xff]  }
  0xec   :  { %581 = vmatmul.mubr.bf16.gmra.mxu0 %v3421_v45  ;;  %v3439_v45 = vld [vmem:[#allocation11 + $0x60] sm:$0xff]  }
  0xed   :  { %590 = vmatprep.mubr.bf16.mxu0 %v3422_v46  ;;  %v3440_v46 = vld [vmem:[#allocation11 + $0x20] sm:$0xff]  }
  0xf4   :  { %591 = vmatmul.mubr.bf16.gmra.mxu0 %v3424_v47  ;;  %v3441_v47 = vld [vmem:[#allocation11 + $0x58] sm:$0xff]  }
  0xf5   :  { %3247 = vmatprep.mubr.msk.bf16.mxu0 %vm637_vm0, %v3425_v48 }
 0x17c   :  { %v522_v50 = vpop.f32.mrf.mxu0 }
 0x17e   :  { %v524_v51 = vpop.f32.mrf.mxu0 }
 0x180   :  { %v526_v52 = vpop.f32.mrf.mxu0 }
 0x181   :  { %v601_v15 = vpack.c.bf16 %v526_v52, %v522_v50  ;;  %v3442_v50 = vld [vmem:[#allocation11 + $0x18] sm:$0xff]   ;;  %v3443_v52 = vld [vmem:[#allocation11 + $0x50] sm:$0xff]  }
 0x182   :  { %v528_v53 = vpop.f32.mrf.mxu0 }
 0x183   :  { %v602_v13 = vpack.c.bf16 %v528_v53, %v524_v51  ;;  %v4061_v51 = vld [vmem:[#allocation5 + $0x38] sm:$0xff]  }
 0x184   :  { %v532_v54 = vpop.f32.mrf.mxu0  ;;  %v3444_v53 = vld [vmem:[#allocation11 + $0x10] sm:$0xff]  }
 0x186   :  { %v534_v55 = vpop.f32.mrf.mxu0 }
 0x188   :  { %v536_v56 = vpop.f32.mrf.mxu0 }
 0x189   :  { %v603_v11 = vpack.c.bf16 %v536_v56, %v532_v54  ;;  %v3445_v54 = vld [vmem:[#allocation11 + $0x48] sm:$0xff]   ;;  %v3447_v56 = vld [vmem:[#allocation11 + $0x40] sm:$0xff]  }
 0x18a   :  { %v538_v57 = vpop.f32.mrf.mxu0 }
 0x18b   :  { %v604_v9 = vpack.c.bf16 %v538_v57, %v534_v55  ;;  %v3446_v55 = vld [vmem:[#allocation11 + $0x8] sm:$0xff]   ;;  %v3448_v57 = vld [vmem:[#allocation11] sm:$0xff]  }
 0x18c   :  { %v542_v58 = vpop.f32.mrf.mxu0 }
 0x18e   :  { %v544_v59 = vpop.f32.mrf.mxu0 }
 0x190   :  { %v546_v60 = vpop.f32.mrf.mxu0 }
 0x191   :  { %v605_v7 = vpack.c.bf16 %v546_v60, %v542_v58  ;;  %v830_v58 = vlaneseq }
 0x192   :  { %v548_v61 = vpop.f32.mrf.mxu0 }
 0x193   :  { %v606_v5 = vpack.c.bf16 %v548_v61, %v544_v59  ;;  %v4065_v59 = vshrl.u32 %v830_v58, 7 }
 0x194   :  { %v552_v62 = vpop.f32.mrf.mxu0 }
 0x195   :  { %v4068_v60 = vsub.s32 1, %v4065_v59  ;;  %v4071_v61 = vsub.s32 0, %v4065_v59 }
 0x196   :  { %v554_v63 = vpop.f32.mrf.mxu0 }
 0x198   :  { %v556_v0 = vpop.f32.mrf.mxu0 }
 0x199   :  { %v607_v3 = vpack.c.bf16 %v556_v0, %v552_v62  ;;  %v828_v62 = vld [vmem:[#allocation10] sm:$0x3] }
 0x19a   :  { %v558_v1 = vpop.f32.mrf.mxu0  ;;  %v4074_v0 = vrot.slane %v828_v62, %v4068_v60 }
 0x19b   :  { %v608_v2 = vpack.c.bf16 %v558_v1, %v554_v63  ;;  %v4077_v1 = vrot.slane %v828_v62, %v4071_v61 }
 0x19c   :  { %v562_v4 = vpop.f32.mrf.mxu0 }
 0x19d   :  { %658 = vmatprep.subr.bf16.mxu1 %v608_v2 }
 0x19e   :  { %v564_v6 = vpop.f32.mrf.mxu0  ;;  %659 = vmatpush1.bf16.msra.mxu1 %v607_v3 }
 0x19f   :  { %660 = vmatprep.subr.bf16.mxu1 %v606_v5 }
 0x1a0   :  { %v566_v8 = vpop.f32.mrf.mxu0 }
 0x1a1   :  { %v609_v37 = vpack.c.bf16 %v566_v8, %v562_v4 }
 0x1a2   :  { %v568_v10 = vpop.f32.mrf.mxu0  ;;  %661 = vmatpush1.bf16.msra.mxu1 %v605_v7 }
 0x1a3   :  { %662 = vmatprep.subr.bf16.mxu1 %v604_v9  ;;  %v610_v35 = vpack.c.bf16 %v568_v10, %v564_v6 }
 0x1a4   :  { %v572_v12 = vpop.f32.mrf.mxu0 }
 0x1a6   :  { %v574_v14 = vpop.f32.mrf.mxu0  ;;  %663 = vmatpush1.bf16.msra.mxu1 %v603_v11 }
 0x1a7   :  { %664 = vmatprep.subr.bf16.mxu1 %v602_v13 }
 0x1a8   :  { %v576_v16 = vpop.f32.mrf.mxu0 }
 0x1a9   :  { %v611_v34 = vpack.c.bf16 %v576_v16, %v572_v12 }
 0x1aa   :  { %v578_v17 = vpop.f32.mrf.mxu0  ;;  %665 = vmatpush1.bf16.msra.mxu1 %v601_v15 }
 0x1ab   :  { %v612_v32 = vpack.c.bf16 %v578_v17, %v574_v14 }
 0x1ac   :  { %v582_v18 = vpop.f32.mrf.mxu0 }
 0x1ad   :  { %2906 = vmatmul.mubr.msk.bf16.vlgmr.msra.gmra.mxu1 %vm637_vm0, %v3425_v48  ;;  %v4056_v48 = vld [vmem:[#allocation5 + $0x30] sm:$0xff]  }
 0x1ae   :  { %v584_v19 = vpop.f32.mrf.mxu0  ;;  %692 = vmatprep.mubr.bf16.mxu1 %v3892_v49 }
 0x1b0   :  { %v586_v20 = vpop.f32.mrf.mxu0 }
 0x1b1   :  { %v613_v31 = vpack.c.bf16 %v586_v20, %v582_v18 }
 0x1b2   :  { %v588_v22 = vpop.f32.mrf.mxu0 }
 0x1b3   :  { %v614_v30 = vpack.c.bf16 %v588_v22, %v584_v19 }
 0x1b4   :  { %v592_v23 = vpop.f32.mrf.mxu0 }
 0x1b5   :  { %2907 = vmatmul.mubr.msk.bf16.gmra.mxu1 %vm637_vm0, %v4031_v21 }
 0x1b6   :  { %v594_v24 = vpop.f32.mrf.mxu0  ;;  %702 = vmatprep.mubr.bf16.mxu1 %v3892_v49 }
 0x1b8   :  { %v596_v25 = vpop.f32.mrf.mxu0 }
 0x1b9   :  { %v615_v29 = vpack.c.bf16 %v596_v25, %v592_v23 }
 0x1ba   :  { %v598_v27 = vpop.f32.mrf.mxu0 }
 0x1bb   :  { %v616_v28 = vpack.c.bf16 %v598_v27, %v594_v24 }
 0x1bd   :  { %2908 = vmatmul.mubr.msk.bf16.gmra.mxu1 %vm637_vm0, %v4036_v26  ;;  %763 = vmatprep.subr.bf16.mxu1 %v616_v28 }
 0x1be   :  { %764 = vmatpush1.bf16.msra.mxu1 %v615_v29  ;;  %712 = vmatprep.mubr.bf16.mxu1 %v3892_v49 }
 0x1bf   :  { %765 = vmatprep.subr.bf16.mxu1 %v614_v30 }
 0x1c2   :  { %766 = vmatpush1.bf16.msra.mxu1 %v613_v31 }
 0x1c3   :  { %767 = vmatprep.subr.bf16.mxu1 %v612_v32 }
 0x1c5   :  { %2909 = vmatmul.mubr.msk.bf16.gmra.mxu1 %vm637_vm0, %v4041_v33 }
 0x1c6   :  { %768 = vmatpush1.bf16.msra.mxu1 %v611_v34  ;;  %787 = vmatprep.mubr.bf16.mxu1 %v3892_v49 }
 0x1c7   :  { %769 = vmatprep.subr.bf16.mxu1 %v610_v35 }
 0x1ca   :  { %770 = vmatpush1.bf16.msra.mxu1 %v609_v37 }
 0x1cb   :  { %3088 = vmatprep.subr.bf16.mxu1 %v3433_v36 }
 0x1cd   :  { %2914 = vmatmul.mubr.msk.bf16.vlgmr.msra.gmra.mxu1 %vm637_vm0, %v4046_v38 }
 0x1ce   :  { %797 = vmatprep.mubr.bf16.mxu1 %v3892_v49  ;;  %3089 = vmatpush3.bf16.msra.mxu1 %v3434_v39 }
 0x1cf   :  { %3090 = vmatprep.subr.bf16.mxu1 %v3435_v40 }
 0x1d2   :  { %3091 = vmatpush3.bf16.msra.mxu1 %v3436_v41 }
 0x1d3   :  { %3092 = vmatprep.subr.bf16.mxu1 %v3437_v42 }
 0x1d5   :  { %2915 = vmatmul.mubr.msk.bf16.gmra.mxu1 %vm637_vm0, %v4051_v43 }
 0x1d6   :  { %807 = vmatprep.mubr.bf16.mxu1 %v3892_v49  ;;  %3093 = vmatpush3.bf16.msra.mxu1 %v3438_v44 }
 0x1d7   :  { %3094 = vmatprep.subr.bf16.mxu1 %v3439_v45 }
 0x1da   :  { %3095 = vmatpush3.bf16.msra.mxu1 %v3440_v46 }
 0x1db   :  { %3096 = vmatprep.subr.bf16.mxu1 %v3441_v47 }
 0x1dd   :  { %2916 = vmatmul.mubr.msk.bf16.gmra.mxu1 %vm637_vm0, %v4056_v48 }
 0x1de   :  { %817 = vmatprep.mubr.bf16.mxu1 %v3892_v49  ;;  %3097 = vmatpush3.bf16.msra.mxu1 %v3442_v50 }
 0x1df   :  { %3098 = vmatprep.subr.bf16.mxu1 %v3443_v52 }
 0x1e2   :  { %3099 = vmatpush3.bf16.msra.mxu1 %v3444_v53 }
 0x1e3   :  { %3100 = vmatprep.subr.bf16.mxu1 %v3445_v54 }
 0x1e5   :  { %2917 = vmatmul.mubr.msk.bf16.gmra.mxu1 %vm637_vm0, %v4061_v51 }
 0x1e6   :  { %3101 = vmatpush3.bf16.msra.mxu1 %v3446_v55 }
 0x1e7   :  { %3102 = vmatprep.subr.bf16.mxu1 %v3447_v56 }
 0x1ea   :  { %3103 = vmatpush3.bf16.msra.mxu1 %v3448_v57 }
 0x26d   :  { %v684_v63 = vpop.f32.mrf.mxu1 }
 0x26e   :  { %v840_v6 = vadd.f32 %v4077_v1, %v684_v63 }
 0x26f   :  { %v686_v2 = vpop.f32.mrf.mxu1 }
 0x270   :  { %v841_v4 = vadd.f32 %v4074_v0, %v686_v2  ;;  %v872_v13 = vmax.f32 %v840_v6, 0.0 }
 0x271   :  { %v688_v3 = vpop.f32.mrf.mxu1 }
 0x272   :  { %v842_v5 = vadd.f32 %v4077_v1, %v688_v3  ;;  %v873_v11 = vmax.f32 %v841_v4, 0.0 }
 0x273   :  { %v690_v7 = vpop.f32.mrf.mxu1 }
 0x274   :  { %v843_v8 = vadd.f32 %v4074_v0, %v690_v7  ;;  %v874_v9 = vmax.f32 %v842_v5, 0.0 }
 0x275   :  { %v694_v10 = vpop.f32.mrf.mxu1 }
 0x276   :  { %v875_v12 = vmax.f32 %v843_v8, 0.0  ;;  %v4085_v16 = vpack.c.bf16 %v874_v9, %v872_v13  ;;  %v844_v20 = vadd.f32 %v4077_v1, %v694_v10 }
 0x277   :  { %v696_v14 = vpop.f32.mrf.mxu1 }
 0x278   :  { %v4083_v15 = vpack.c.bf16 %v875_v12, %v873_v11  ;;  %v845_v18 = vadd.f32 %v4074_v0, %v696_v14  ;;  %v876_v29 = vmax.f32 %v844_v20, 0.0 }
 0x279   :  { %v698_v17 = vpop.f32.mrf.mxu1 }
 0x27a   :  { %v846_v19 = vadd.f32 %v4077_v1, %v698_v17  ;;  %1080 = vmatprep.mubr.bf16.mxu1 %v4083_v15  ;;  %v877_v27 = vmax.f32 %v845_v18, 0.0 }
 0x27b   :  { %v700_v22 = vpop.f32.mrf.mxu1  ;;  %1081 = vmatmul.mubr.bf16.vlgmr.msra.gmra.mxu1 %v4085_v16 }
 0x27c   :  { %v847_v23 = vadd.f32 %v4074_v0, %v700_v22  ;;  %v878_v24 = vmax.f32 %v846_v19, 0.0 }
 0x27d   :  { %v704_v25 = vpop.f32.mrf.mxu1 }
 0x27e   :  { %v879_v28 = vmax.f32 %v847_v23, 0.0  ;;  %v4095_v32 = vpack.c.bf16 %v878_v24, %v876_v29  ;;  %v848_v37 = vadd.f32 %v4077_v1, %v704_v25 }
 0x27f   :  { %v706_v30 = vpop.f32.mrf.mxu1 }
 0x280   :  { %v4093_v31 = vpack.c.bf16 %v879_v28, %v877_v27  ;;  %v849_v35 = vadd.f32 %v4074_v0, %v706_v30  ;;  %v880_v46 = vmax.f32 %v848_v37, 0.0 }
 0x281   :  { %v708_v34 = vpop.f32.mrf.mxu1 }
 0x282   :  { %v850_v36 = vadd.f32 %v4077_v1, %v708_v34  ;;  %1088 = vmatprep.mubr.bf16.mxu1 %v4093_v31  ;;  %v881_v44 = vmax.f32 %v849_v35, 0.0 }
 0x283   :  { %v710_v39 = vpop.f32.mrf.mxu1  ;;  %1089 = vmatmul.mubr.bf16.gmra.mxu1 %v4095_v32 }
 0x284   :  { %v851_v40 = vadd.f32 %v4074_v0, %v710_v39  ;;  %v882_v41 = vmax.f32 %v850_v36, 0.0 }
 0x285   :  { %v714_v42 = vpop.f32.mrf.mxu1 }
 0x286   :  { %v883_v45 = vmax.f32 %v851_v40, 0.0  ;;  %v4105_v52 = vpack.c.bf16 %v882_v41, %v880_v46  ;;  %v852_v56 = vadd.f32 %v4077_v1, %v714_v42 }
 0x287   :  { %v716_v47 = vpop.f32.mrf.mxu1 }
 0x288   :  { %v4103_v50 = vpack.c.bf16 %v883_v45, %v881_v44  ;;  %v853_v54 = vadd.f32 %v4074_v0, %v716_v47  ;;  %v884_v4 = vmax.f32 %v852_v56, 0.0 }
 0x289   :  { %v718_v53 = vpop.f32.mrf.mxu1 }
 0x28a   :  { %v854_v55 = vadd.f32 %v4077_v1, %v718_v53  ;;  %1096 = vmatprep.mubr.bf16.mxu1 %v4103_v50  ;;  %v885_v2 = vmax.f32 %v853_v54, 0.0 }
 0x28b   :  { %v720_v57 = vpop.f32.mrf.mxu1  ;;  %1097 = vmatmul.mubr.bf16.gmra.mxu1 %v4105_v52 }
 0x28c   :  { %v855_v58 = vadd.f32 %v4074_v0, %v720_v57  ;;  %v886_v62 = vmax.f32 %v854_v55, 0.0 }
 0x28d   :  { %v789_v63 = vpop.f32.mrf.mxu1 }
 0x28e   :  { %v887_v3 = vmax.f32 %v855_v58, 0.0  ;;  %v4115_v7 = vpack.c.bf16 %v886_v62, %v884_v4  ;;  %v856_v11 = vadd.f32 %v4077_v1, %v789_v63 }
 0x28f   :  { %v791_v5 = vpop.f32.mrf.mxu1 }
 0x290   :  { %v4113_v6 = vpack.c.bf16 %v887_v3, %v885_v2  ;;  %v857_v9 = vadd.f32 %v4074_v0, %v791_v5  ;;  %v888_v20 = vmax.f32 %v856_v11, 0.0 }
 0x291   :  { %v793_v8 = vpop.f32.mrf.mxu1 }
 0x292   :  { %v858_v10 = vadd.f32 %v4077_v1, %v793_v8  ;;  %1104 = vmatprep.mubr.bf16.mxu1 %v4113_v6  ;;  %v889_v18 = vmax.f32 %v857_v9, 0.0 }
 0x293   :  { %v795_v12 = vpop.f32.mrf.mxu1  ;;  %1105 = vmatmul.mubr.bf16.gmra.mxu1 %v4115_v7 }
 0x294   :  { %v859_v13 = vadd.f32 %v4074_v0, %v795_v12  ;;  %v890_v14 = vmax.f32 %v858_v10, 0.0 }
 0x295   :  { %v799_v17 = vpop.f32.mrf.mxu1 }
 0x296   :  { %v891_v19 = vmax.f32 %v859_v13, 0.0  ;;  %v912_v24 = vpack.c.bf16 %v890_v14, %v888_v20  ;;  %v860_v29 = vadd.f32 %v4077_v1, %v799_v17 }
 0x297   :  { %v801_v22 = vpop.f32.mrf.mxu1 }
 0x298   :  { %v913_v23 = vpack.c.bf16 %v891_v19, %v889_v18  ;;  %v861_v27 = vadd.f32 %v4074_v0, %v801_v22  ;;  %v892_v40 = vmax.f32 %v860_v29, 0.0 }
 0x299   :  { %v803_v25 = vpop.f32.mrf.mxu1 }
 0x29a   :  { %v862_v28 = vadd.f32 %v4077_v1, %v803_v25  ;;  %1112 = vmatprep.mubr.bf16.mxu1 %v913_v23  ;;  %v893_v37 = vmax.f32 %v861_v27, 0.0 }
 0x29b   :  { %v805_v30 = vpop.f32.mrf.mxu1  ;;  %1113 = vmatmul.mubr.bf16.gmra.mxu1 %v912_v24 }
 0x29c   :  { %v863_v34 = vadd.f32 %v4074_v0, %v805_v30  ;;  %v894_v35 = vmax.f32 %v862_v28, 0.0 }
 0x29d   :  { %v809_v36 = vpop.f32.mrf.mxu1 }
 0x29e   :  { %v895_v39 = vmax.f32 %v863_v34, 0.0  ;;  %v914_v44 = vpack.c.bf16 %v894_v35, %v892_v40  ;;  %v864_v53 = vadd.f32 %v4077_v1, %v809_v36 }
 0x29f   :  { %v811_v41 = vpop.f32.mrf.mxu1 }
 0x2a0   :  { %v915_v42 = vpack.c.bf16 %v895_v39, %v893_v37  ;;  %v865_v46 = vadd.f32 %v4074_v0, %v811_v41  ;;  %v896_v63 = vmax.f32 %v864_v53, 0.0 }
 0x2a1   :  { %v813_v45 = vpop.f32.mrf.mxu1 }
 0x2a2   :  { %v866_v47 = vadd.f32 %v4077_v1, %v813_v45  ;;  %1120 = vmatprep.mubr.bf16.mxu1 %v915_v42  ;;  %v897_v58 = vmax.f32 %v865_v46, 0.0 }
 0x2a3   :  { %v815_v54 = vpop.f32.mrf.mxu1  ;;  %1121 = vmatmul.mubr.bf16.gmra.mxu1 %v914_v44 }
 0x2a4   :  { %v867_v55 = vadd.f32 %v4074_v0, %v815_v54  ;;  %v898_v56 = vmax.f32 %v866_v47, 0.0 }
 0x2a5   :  { %v819_v57 = vpop.f32.mrf.mxu1 }
 0x2a6   :  { %v899_v62 = vmax.f32 %v867_v55, 0.0  ;;  %v916_v4 = vpack.c.bf16 %v898_v56, %v896_v63  ;;  %v868_v10 = vadd.f32 %v4077_v1, %v819_v57 }
 0x2a7   :  { %v821_v2 = vpop.f32.mrf.mxu1 }
 0x2a8   :  { %v917_v3 = vpack.c.bf16 %v899_v62, %v897_v58  ;;  %v869_v8 = vadd.f32 %v4074_v0, %v821_v2  ;;  %v900_v18 = vmax.f32 %v868_v10, 0.0 }
 0x2a9   :  { %v823_v5 = vpop.f32.mrf.mxu1 }
 0x2aa   :  { %v870_v9 = vadd.f32 %v4077_v1, %v823_v5  ;;  %1128 = vmatprep.mubr.bf16.mxu1 %v917_v3  ;;  %v901_v14 = vmax.f32 %v869_v8, 0.0 }
 0x2ab   :  { %v825_v11 = vpop.f32.mrf.mxu1  ;;  %1129 = vmatmul.mubr.bf16.gmra.mxu1 %v916_v4 }
 0x2ac   :  { %v871_v12 = vadd.f32 %v4074_v0, %v825_v11  ;;  %v902_v13 = vmax.f32 %v870_v9, 0.0 }
 0x2ae   :  { %v903_v17 = vmax.f32 %v871_v12, 0.0  ;;  %v918_v20 = vpack.c.bf16 %v902_v13, %v900_v18 }
 0x2b0   :  { %v919_v19 = vpack.c.bf16 %v903_v17, %v901_v14 }
 0x2b2   :  { %1136 = vmatprep.mubr.bf16.mxu1 %v919_v19  ;;  %1336 = vmatprep.subr.bf16.mxu1 %v919_v19 }
 0x2b3   :  { %1137 = vmatmul.mubr.bf16.gmra.mxu1 %v918_v20 }
 0x2b4   :  { %1337 = vmatpush1.bf16.msra.mxu1 %v918_v20  ;;  %1368 = vmatprep.mubr.bf16.mxu1 %v3892_v49 }
 0x2b5   :  { %1338 = vmatprep.subr.bf16.mxu1 %v917_v3 }
 0x2b8   :  { %1339 = vmatpush1.bf16.msra.mxu1 %v916_v4 }
 0x2b9   :  { %1340 = vmatprep.subr.bf16.mxu1 %v915_v42 }
 0x2bc   :  { %1341 = vmatpush1.bf16.msra.mxu1 %v914_v44 }
 0x2bd   :  { %1342 = vmatprep.subr.bf16.mxu1 %v913_v23 }
 0x2c0   :  { %1343 = vmatpush1.bf16.msra.mxu1 %v912_v24 }
 0x2c1   :  { %1344 = vmatprep.subr.bf16.mxu1 %v4113_v6 }
 0x2c4   :  { %1345 = vmatpush1.bf16.msra.mxu1 %v4115_v7 }
 0x2c5   :  { %1346 = vmatprep.subr.bf16.mxu1 %v4103_v50 }
 0x2c8   :  { %1347 = vmatpush1.bf16.msra.mxu1 %v4105_v52 }
 0x2c9   :  { %1348 = vmatprep.subr.bf16.mxu1 %v4093_v31 }
 0x2cc   :  { %1349 = vmatpush1.bf16.msra.mxu1 %v4095_v32 }
 0x2cd   :  { %1350 = vmatprep.subr.bf16.mxu1 %v4083_v15 }
 0x2d0   :  { %1351 = vmatpush1.bf16.msra.mxu1 %v4085_v16 }
 0x33b   :  { %v3104_v0 = vpop.f32.mrf.mxu1 }
 0x33d   :  { %v3105_v1 = vpop.f32.mrf.mxu1 }
 0x33e   :  { %v3106_v54 = vadd.f32 %v3105_v1, %v3104_v0  ;;  %v4159_v0 = vld [vmem:[#allocation7] sm:$0xff]  }
 0x33f   :  { %v3107_v22 = vpop.f32.mrf.mxu1  ;;  %1369 = vmatmul.mubr.bf16.vlgmr.msra.gmra.mxu1 %v4159_v0  ;;  %v3450_v1 = vld [vmem:[#allocation16 + $0xa8] ss:$12 sps:$4 sm:$0xff]  }
 0x340   :  { %1679 = vmatprep.mubr.bf16.mxu1 %v3892_v49 }
 0x341   :  { %v3108_v23 = vpop.f32.mrf.mxu1 }
 0x342   :  { %v3109_v46 = vadd.f32 %v3108_v23, %v3107_v22  ;;  %v3452_v22 = vld [vmem:[#allocation16 + $0xac] ss:$12 sps:$4 sm:$0xff]  }
 0x343   :  { %v3110_v24 = vpop.f32.mrf.mxu1  ;;  %1647 = vmatprep.subr.bf16.mxu1 %v3452_v22  ;;  %v3458_v23 = vld [vmem:[#allocation16 + $0x78] ss:$12 sps:$4 sm:$0xff]  }
 0x344   :  { %v1145_v56 = vpack.c.bf16 %v3109_v46, %v3106_v54  ;;  %1648 = vmatpush1.bf16.msra.mxu1 %v3450_v1 }
 0x345   :  { %v3111_v6 = vpop.f32.mrf.mxu1 }
 0x346   :  { %v3112_v44 = vadd.f32 %v3111_v6, %v3110_v24  ;;  %v3464_v24 = vld [vmem:[#allocation16 + $0x64] ss:$12 sps:$4 sm:$0xff]   ;;  %v3462_v6 = vld [vmem:[#allocation16 + $0x60] ss:$12 sps:$4 sm:$0xff]  }
 0x347   :  { %v3113_v25 = vpop.f32.mrf.mxu1 }
 0x349   :  { %v3114_v7 = vpop.f32.mrf.mxu1 }
 0x34a   :  { %v3115_v40 = vadd.f32 %v3114_v7, %v3113_v25  ;;  %v3468_v25 = vld [vmem:[#allocation16 + $0x4c] ss:$12 sps:$4 sm:$0xff]   ;;  %v3466_v7 = vld [vmem:[#allocation16 + $0x48] ss:$12 sps:$4 sm:$0xff]  }
 0x34b   :  { %v3116_v27 = vpop.f32.mrf.mxu1 }
 0x34c   :  { %v1146_v47 = vpack.c.bf16 %v3115_v40, %v3112_v44 }
 0x34d   :  { %v3117_v50 = vpop.f32.mrf.mxu1 }
 0x34e   :  { %v3118_v36 = vadd.f32 %v3117_v50, %v3116_v27  ;;  %v3472_v27 = vld [vmem:[#allocation16 + $0x34] ss:$12 sps:$4 sm:$0xff]   ;;  %v3470_v50 = vld [vmem:[#allocation16 + $0x30] ss:$12 sps:$4 sm:$0xff]  }
 0x34f   :  { %v3119_v28 = vpop.f32.mrf.mxu1 }
 0x351   :  { %v3120_v52 = vpop.f32.mrf.mxu1 }
 0x352   :  { %v3121_v34 = vadd.f32 %v3120_v52, %v3119_v28  ;;  %v3476_v28 = vld [vmem:[#allocation16 + $0x1c] ss:$12 sps:$4 sm:$0xff]   ;;  %v3474_v52 = vld [vmem:[#allocation16 + $0x18] ss:$12 sps:$4 sm:$0xff]  }
 0x353   :  { %v3122_v29 = vpop.f32.mrf.mxu1 }
 0x354   :  { %v1147_v41 = vpack.c.bf16 %v3121_v34, %v3118_v36 }
 0x355   :  { %v3123_v31 = vpop.f32.mrf.mxu1 }
 0x356   :  { %v3124_v15 = vadd.f32 %v3123_v31, %v3122_v29 }
 0x357   :  { %v3125_v30 = vpop.f32.mrf.mxu1 }
 0x359   :  { %v3126_v32 = vpop.f32.mrf.mxu1 }
 0x35a   :  { %v3127_v35 = vadd.f32 %v3126_v32, %v3125_v30 }
 0x35b   :  { %v3128_v16 = vpop.f32.mrf.mxu1 }
 0x35c   :  { %v1148_v37 = vpack.c.bf16 %v3127_v35, %v3124_v15 }
 0x35d   :  { %v3129_v39 = vpop.f32.mrf.mxu1 }
 0x35e   :  { %3239 = vmatprep.subr.bf16.mxu0 %v1148_v37 }
 0x35f   :  { %v3131_v42 = vpop.f32.mrf.mxu1  ;;  %3240 = vmatpush3.bf16.msra.mxu0 %v1148_v37 }
 0x360   :  { %3241 = vmatprep.subr.bf16.mxu0 %v1147_v41 }
 0x361   :  { %v3132_v45 = vpop.f32.mrf.mxu1 }
 0x362   :  { %v3133_v18 = vadd.f32 %v3132_v45, %v3131_v42  ;;  %v2942_v42 = vld [vmem:[#allocation13] ss:$0 sm:$0xff] }
 0x363   :  { %v3134_v53 = vpop.f32.mrf.mxu1  ;;  %3242 = vmatpush3.bf16.msra.mxu0 %v1147_v41 }
 0x364   :  { %3243 = vmatprep.subr.bf16.mxu0 %v1146_v47 }
 0x365   :  { %v3135_v55 = vpop.f32.mrf.mxu1 }
 0x367   :  { %v3137_v57 = vpop.f32.mrf.mxu1  ;;  %3244 = vmatpush3.bf16.msra.mxu0 %v1146_v47 }
 0x368   :  { %3245 = vmatprep.subr.bf16.mxu0 %v1145_v56 }
 0x369   :  { %v3138_v58 = vpop.f32.mrf.mxu1 }
 0x36a   :  { %v3139_v14 = vadd.f32 %v3138_v58, %v3137_v57 }
 0x36b   :  { %v3140_v62 = vpop.f32.mrf.mxu1  ;;  %3246 = vmatpush3.bf16.msra.mxu0 %v1145_v56 }
 0x36d   :  { %v3141_v63 = vpop.f32.mrf.mxu1 }
 0x36e   :  { %3248 = vmatmul.mubr.msk.bf16.vlgmr.msra.gmra.mxu0 %vm637_vm0, %v4031_v21  ;;  %v3142_v13 = vadd.f32 %v3141_v63, %v3140_v62 }
 0x36f   :  { %v3143_v2 = vpop.f32.mrf.mxu1  ;;  %3251 = vmatprep.mubr.msk.bf16.mxu0 %vm637_vm0, %v4036_v26  ;;  %v3136_v26 = vadd.f32 %v3135_v55, %v3134_v53 }
 0x371   :  { %v3144_v3 = vpop.f32.mrf.mxu1  ;;  %v1150_v19 = vpack.c.bf16 %v3139_v14, %v3136_v26 }
 0x372   :  { %v3145_v10 = vadd.f32 %v3144_v3, %v3143_v2 }
 0x373   :  { %v3146_v4 = vpop.f32.mrf.mxu1 }
 0x374   :  { %v1151_v17 = vpack.c.bf16 %v3145_v10, %v3142_v13 }
 0x375   :  { %v3147_v5 = vpop.f32.mrf.mxu1 }
 0x376   :  { %3252 = vmatmul.mubr.msk.bf16.gmra.mxu0 %vm637_vm0, %v4041_v33  ;;  %v3148_v11 = vadd.f32 %v3147_v5, %v3146_v4  ;;  %v3130_v33 = vadd.f32 %v3129_v39, %v3128_v16 }
 0x377   :  { %v3149_v8 = vpop.f32.mrf.mxu1  ;;  %3263 = vmatprep.mubr.msk.bf16.mxu0 %vm637_vm0, %v4046_v38  ;;  %v3893_v38 = vmov 0.0  }
 0x378   :  { %v1149_v20 = vpack.c.bf16 %v3133_v18, %v3130_v33 }
 0x379   :  { %v3150_v9 = vpop.f32.mrf.mxu1 }
 0x37a   :  { %v3151_v12 = vadd.f32 %v3150_v9, %v3149_v8 }
 0x37c   :  { %v1152_v21 = vpack.c.bf16 %v3151_v12, %v3148_v11 }
 0x37e   :  { %3255 = vmatprep.subr.bf16.mxu0 %v1152_v21 }
 0x37f   :  { %3256 = vmatpush3.bf16.msra.mxu0 %v1152_v21 }
 0x380   :  { %3257 = vmatprep.subr.bf16.mxu0 %v1151_v17 }
 0x383   :  { %3258 = vmatpush3.bf16.msra.mxu0 %v1151_v17 }
 0x384   :  { %3259 = vmatprep.subr.bf16.mxu0 %v1150_v19 }
 0x387   :  { %3260 = vmatpush3.bf16.msra.mxu0 %v1150_v19 }
 0x388   :  { %3261 = vmatprep.subr.bf16.mxu0 %v1149_v20 }
 0x38b   :  { %3262 = vmatpush3.bf16.msra.mxu0 %v1149_v20 }
 0x38c   :  { %3271 = vmatprep.subr.bf16.mxu0 %v3893_v38 }
 0x38e   :  { %3264 = vmatmul.mubr.msk.bf16.vlgmr.msra.gmra.mxu0 %vm637_vm0, %v4051_v43  ;;  %v3456_v43 = vld [vmem:[#allocation16 + $0x94] ss:$12 sps:$4 sm:$0xff]  }
 0x38f   :  { %3267 = vmatprep.mubr.msk.bf16.mxu0 %vm637_vm0, %v4056_v48  ;;  %v3454_v48 = vld [vmem:[#allocation16 + $0x90] ss:$12 sps:$4 sm:$0xff]   ;;  %1649 = vmatprep.subr.bf16.mxu1 %v3456_v43 }
 0x390   :  { %1650 = vmatpush1.bf16.msra.mxu1 %v3454_v48 }
 0x396   :  { %3268 = vmatmul.mubr.msk.bf16.gmra.mxu0 %vm637_vm0, %v4061_v51  ;;  %v3460_v51 = vld [vmem:[#allocation16 + $0x7c] ss:$12 sps:$4 sm:$0xff]  }
 0x397   :  { %3287 = vmatprep.mubr.msk.bf16.mxu0 %vm3894_vm1, %v3893_v38  ;;  %1651 = vmatprep.subr.bf16.mxu1 %v3460_v51 }
 0x398   :  { %1652 = vmatpush1.bf16.msra.mxu1 %v3458_v23 }
 0x399   :  { %1653 = vmatprep.subr.bf16.mxu1 %v3464_v24 }
 0x39c   :  { %1654 = vmatpush1.bf16.msra.mxu1 %v3462_v6 }
 0x39d   :  { %1655 = vmatprep.subr.bf16.mxu1 %v3468_v25 }
 0x3a0   :  { %1656 = vmatpush1.bf16.msra.mxu1 %v3466_v7 }
 0x3a1   :  { %1657 = vmatprep.subr.bf16.mxu1 %v3472_v27 }
 0x3a4   :  { %1658 = vmatpush1.bf16.msra.mxu1 %v3470_v50 }
 0x3a5   :  { %1659 = vmatprep.subr.bf16.mxu1 %v3476_v28 }
 0x3a8   :  { %1660 = vmatpush1.bf16.msra.mxu1 %v3474_v52  ;;  %v3453_v52 = vld [vmem:[#allocation16 + $0xb0] ss:$12 sps:$4 sm:$0xff]  }
 0x42e   :  { %v3249_v29 = vpop.f32.mrf.mxu0 }
 0x42f   :  { %v1292_v20 = vadd.f32 %v3249_v29, %v2942_v42  ;;  %v3457_v29 = vld [vmem:[#allocation16 + $0x98] ss:$12 sps:$4 sm:$0xff]  }
 0x430   :  { %v1187_v31 = vpop.f32.mrf.mxu0 }
 0x431   :  { %v1308_v51 = vmax.f32 %v1292_v20, 0.0  ;;  %v1290_v23 = vadd.f32 %v2942_v42, %v1187_v31  ;;  %v3461_v31 = vld [vmem:[#allocation16 + $0x80] ss:$12 sps:$4 sm:$0xff]  }
 0x432   :  { %v3250_v30 = vpop.f32.mrf.mxu0  ;;  %v3515_v20 = vld [vmem:[#allocation14 + $0xe0] ss:$12 sps:$4 sm:$0xff]  }
 0x433   :  { %v1293_v1 = vadd.f32 %v3250_v30, %v2942_v42  ;;  %v1306_v7 = vmax.f32 %v1290_v23, 0.0  ;;  %v3465_v30 = vld [vmem:[#allocation16 + $0x68] ss:$12 sps:$4 sm:$0xff]  }
 0x434   :  { %v1190_v32 = vpop.f32.mrf.mxu0  ;;  %v3521_v23 = vld [vmem:[#allocation14 + $0x8] ss:$12 sps:$4 sm:$0xff]  }
 0x435   :  { %v1309_v24 = vmax.f32 %v1293_v1, 0.0  ;;  %v1291_v6 = vadd.f32 %v2942_v42, %v1190_v32  ;;  %v3469_v32 = vld [vmem:[#allocation16 + $0x50] ss:$12 sps:$4 sm:$0xff]   ;;  %v3512_v1 = vld [vmem:[#allocation14 + $0x18] ss:$12 sps:$4 sm:$0xff]  }
 0x436   :  { %v3253_v34 = vpop.f32.mrf.mxu0 }
 0x437   :  { %v1296_v11 = vadd.f32 %v3253_v34, %v2942_v42  ;;  %v1323_v27 = vpack.c.bf16 %v1309_v24, %v1308_v51  ;;  %v1307_v50 = vmax.f32 %v1291_v6, 0.0  ;;  %v3477_v34 = vld [vmem:[#allocation16 + $0x20] ss:$12 sps:$4 sm:$0xff]  }
 0x438   :  { %v1203_v15 = vpop.f32.mrf.mxu0  ;;  %v3517_v51 = vld [vmem:[#allocation14] ss:$12 sps:$4 sm:$0xff]  }
 0x439   :  { %v1312_v17 = vmax.f32 %v1296_v11, 0.0  ;;  %v1294_v26 = vadd.f32 %v2942_v42, %v1203_v15  ;;  %v1322_v28 = vpack.c.bf16 %v1307_v50, %v1306_v7  ;;  %v3480_v15 = vld [vmem:[#allocation16 + $0x4] ss:$12 sps:$4 sm:$0xff]   ;;  %v3501_v11 = vld [vmem:[#allocation14 + $0x68] ss:$12 sps:$4 sm:$0xff]  }
 0x43a   :  { %v3254_v35 = vpop.f32.mrf.mxu0  ;;  %1661 = vmatprep.subr.bf16.mxu1 %v3480_v15  ;;  %v3524_v24 = vld [vmem:[#allocation14 + $0x16c] ss:$12 sps:$4 sm:$0xff]   ;;  %v3522_v7 = vld [vmem:[#allocation14 + $0x168] ss:$12 sps:$4 sm:$0xff]  }
 0x43b   :  { %v1297_v12 = vadd.f32 %v3254_v35, %v2942_v42  ;;  %v1310_v22 = vmax.f32 %v1294_v26, 0.0  ;;  %v3478_v35 = vld [vmem:[#allocation16] ss:$12 sps:$4 sm:$0xff]   ;;  %v3510_v26 = vld [vmem:[#allocation14 + $0xf8] ss:$12 sps:$4 sm:$0xff]  }
 0x43c   :  { %v1206_v16 = vpop.f32.mrf.mxu0  ;;  %1662 = vmatpush1.bf16.msra.mxu1 %v3478_v35  ;;  %v3548_v6 = vld [vmem:[#allocation17 + $0xac] ss:$12 sps:$4 sm:$0xff]   ;;  %v3527_v50 = vld [vmem:[#allocation14 + $0x154] ss:$12 sps:$4 sm:$0xff]  }
 0x43d   :  { %v1313_v18 = vmax.f32 %v1297_v12, 0.0  ;;  %v1295_v19 = vadd.f32 %v2942_v42, %v1206_v16  ;;  %v3481_v16 = vld [vmem:[#allocation16 + $0x8] ss:$12 sps:$4 sm:$0xff]   ;;  %v3504_v12 = vld [vmem:[#allocation14 + $0x4c] ss:$12 sps:$4 sm:$0xff]  }
 0x43e   :  { %v3534_v15 = vld [vmem:[#allocation14 + $0x108] ss:$12 sps:$4 sm:$0xff]  }
 0x43f   :  { %v1325_v43 = vpack.c.bf16 %v1313_v18, %v1312_v17  ;;  %v1311_v48 = vmax.f32 %v1295_v19, 0.0  ;;  %v3509_v17 = vld [vmem:[#allocation14 + $0x34] ss:$12 sps:$4 sm:$0xff]   ;;  %v3507_v18 = vld [vmem:[#allocation14 + $0x30] ss:$12 sps:$4 sm:$0xff]  }
 0x440   :  { %v3511_v19 = vld [vmem:[#allocation14 + $0x38] ss:$12 sps:$4 sm:$0xff]   ;;  %v3539_v35 = vld [vmem:[#allocation14 + $0xf4] ss:$12 sps:$4 sm:$0xff]  }
 0x441   :  { %v1324_v25 = vpack.c.bf16 %v1311_v48, %v1310_v22  ;;  %v3516_v22 = vld [vmem:[#allocation14 + $0x20] ss:$12 sps:$4 sm:$0xff]   ;;  %v3520_v48 = vld [vmem:[#allocation14 + $0xc8] ss:$12 sps:$4 sm:$0xff]  }
 0x44e   :  { %v3265_v36 = vpop.f32.mrf.mxu0 }
 0x44f   :  { %v1300_v2 = vadd.f32 %v3265_v36, %v2942_v42  ;;  %v3484_v36 = vld [vmem:[#allocation14 + $0xac] ss:$12 sps:$4 sm:$0xff]  }
 0x450   :  { %v1252_v37 = vpop.f32.mrf.mxu0  ;;  %1987 = vmatprep.subr.bf16.mxu1 %v3484_v36  ;;  %v3542_v36 = vld [vmem:[#allocation14 + $0xdc] ss:$12 sps:$4 sm:$0xff]  }
 0x451   :  { %v1316_v9 = vmax.f32 %v1300_v2, 0.0  ;;  %v1298_v10 = vadd.f32 %v2942_v42, %v1252_v37  ;;  %v3485_v37 = vld [vmem:[#allocation14 + $0x170] ss:$12 sps:$4 sm:$0xff]  }
 0x452   :  { %v3266_v39 = vpop.f32.mrf.mxu0  ;;  %v3494_v2 = vld [vmem:[#allocation14 + $0x7c] ss:$12 sps:$4 sm:$0xff]  }
 0x453   :  { %v1301_v58 = vadd.f32 %v3266_v39, %v2942_v42  ;;  %v1314_v14 = vmax.f32 %v1298_v10, 0.0  ;;  %v4183_v39 = vpop.f32.mrf.mxu1  ;;  %v3497_v10 = vld [vmem:[#allocation14 + $0x60] ss:$12 sps:$4 sm:$0xff]  }
 0x454   :  { %v1255_v40 = vpop.f32.mrf.mxu0 }
 0x455   :  { %v1317_v4 = vmax.f32 %v1301_v58, 0.0  ;;  %v1299_v5 = vadd.f32 %v2942_v42, %v1255_v40  ;;  %v1372_v40 = vpop.f32.mrf.mxu1 }
 0x456   :  { %v3269_v41 = vpop.f32.mrf.mxu0 }
 0x457   :  { %v1304_v45 = vadd.f32 %v3269_v41, %v2942_v42  ;;  %v1327_v13 = vpack.c.bf16 %v1317_v4, %v1316_v9  ;;  %v1315_v21 = vmax.f32 %v1299_v5, 0.0  ;;  %v4185_v41 = vpop.f32.mrf.mxu1  ;;  %v3492_v4 = vld [vmem:[#allocation14 + $0x78] ss:$12 sps:$4 sm:$0xff]   ;;  %v3496_v5 = vld [vmem:[#allocation14 + $0x80] ss:$12 sps:$4 sm:$0xff]  }
 0x458   :  { %v1268_v44 = vpop.f32.mrf.mxu0  ;;  %v3500_v9 = vld [vmem:[#allocation14 + $0x128] ss:$12 sps:$4 sm:$0xff]  }
 0x459   :  { %v1320_v54 = vmax.f32 %v1304_v45, 0.0  ;;  %v1302_v55 = vadd.f32 %v2942_v42, %v1268_v44  ;;  %v1326_v33 = vpack.c.bf16 %v1315_v21, %v1314_v14  ;;  %v1376_v45 = vpop.f32.mrf.mxu1  ;;  %v3502_v21 = vld [vmem:[#allocation14 + $0x48] ss:$12 sps:$4 sm:$0xff]   ;;  %v3506_v14 = vld [vmem:[#allocation14 + $0x50] ss:$12 sps:$4 sm:$0xff]  }
 0x45a   :  { %v3270_v46 = vpop.f32.mrf.mxu0  ;;  %v1380_v58 = vpack.c.bf16 %v1376_v45, %v1372_v40  ;;  %v3543_v40 = vld [vmem:[#allocation14 + $0xc0] ss:$12 sps:$4 sm:$0xff]   ;;  %v3558_v45 = vld [vmem:[#allocation17 + $0x78] ss:$12 sps:$4 sm:$0xff]  }
 0x45b   :  { %v1305_v47 = vadd.f32 %v3270_v46, %v2942_v42  ;;  %v1318_v3 = vmax.f32 %v1302_v55, 0.0  ;;  %v3489_v55 = vld [vmem:[#allocation14 + $0x94] ss:$12 sps:$4 sm:$0xff]  }
 0x45c   :  { %v1271_v53 = vpop.f32.mrf.mxu0 }
 0x45d   :  { %v1321_v56 = vmax.f32 %v1305_v47, 0.0  ;;  %v1303_v57 = vadd.f32 %v2942_v42, %v1271_v53  ;;  %v3482_v47 = vld [vmem:[#allocation14 + $0xa8] ss:$12 sps:$4 sm:$0xff]   ;;  %v3486_v53 = vld [vmem:[#allocation14 + $0xb0] ss:$12 sps:$4 sm:$0xff]  }
 0x45f   :  { %v1329_v62 = vpack.c.bf16 %v1321_v56, %v1320_v54  ;;  %v1319_v63 = vmax.f32 %v1303_v57, 0.0  ;;  %v3490_v56 = vld [vmem:[#allocation14 + $0x158] ss:$12 sps:$4 sm:$0xff]  }
 0x461   :  { %3272 = vmatpush3.bf16.msra.mxu0 %v1329_v62  ;;  %v1328_v8 = vpack.c.bf16 %v1319_v63, %v1318_v3  ;;  %v3487_v62 = vld [vmem:[#allocation14 + $0x90] ss:$12 sps:$4 sm:$0xff]   ;;  %v3491_v63 = vld [vmem:[#allocation14 + $0x98] ss:$12 sps:$4 sm:$0xff]   ;;  %v3495_v3 = vld [vmem:[#allocation14 + $0x140] ss:$12 sps:$4 sm:$0xff]  }
 0x462   :  { %3273 = vmatprep.subr.bf16.mxu0 %v3893_v38 }
 0x465   :  { %3274 = vmatpush3.bf16.msra.mxu0 %v1328_v8  ;;  %v3499_v8 = vld [vmem:[#allocation14 + $0x64] ss:$12 sps:$4 sm:$0xff]  }
 0x466   :  { %3275 = vmatprep.subr.bf16.mxu0 %v3893_v38 }
 0x469   :  { %3276 = vmatpush3.bf16.msra.mxu0 %v1327_v13  ;;  %v3505_v13 = vld [vmem:[#allocation14 + $0x110] ss:$12 sps:$4 sm:$0xff]  }
 0x46a   :  { %3277 = vmatprep.subr.bf16.mxu0 %v3893_v38 }
 0x46d   :  { %3278 = vmatpush3.bf16.msra.mxu0 %v1326_v33  ;;  %v3514_v33 = vld [vmem:[#allocation14 + $0x1c] ss:$12 sps:$4 sm:$0xff]  }
 0x46e   :  { %3279 = vmatprep.subr.bf16.mxu0 %v3893_v38 }
 0x471   :  { %3280 = vmatpush3.bf16.msra.mxu0 %v1325_v43  ;;  %v3519_v43 = vld [vmem:[#allocation14 + $0x4] ss:$12 sps:$4 sm:$0xff]  }
 0x472   :  { %3281 = vmatprep.subr.bf16.mxu0 %v3893_v38 }
 0x475   :  { %3282 = vmatpush3.bf16.msra.mxu0 %v1324_v25  ;;  %v1379_v25 = vpack.c.bf16 %v4185_v41, %v4183_v39  ;;  %v3545_v39 = vld [vmem:[#allocation14 + $0xc4] ss:$12 sps:$4 sm:$0xff]   ;;  %v3551_v41 = vld [vmem:[#allocation17 + $0x22c] ss:$12 sps:$4 sm:$0xff]  }
 0x476   :  { %3283 = vmatprep.subr.bf16.mxu0 %v3893_v38 }
 0x479   :  { %3284 = vmatpush3.bf16.msra.mxu0 %v1323_v27  ;;  %v3546_v27 = vld [vmem:[#allocation17 + $0xa8] ss:$12 sps:$4 sm:$0xff]  }
 0x47a   :  { %3285 = vmatprep.subr.bf16.mxu0 %v3893_v38 }
 0x47d   :  { %3286 = vmatpush3.bf16.msra.mxu0 %v1322_v28  ;;  %v3554_v28 = vld [vmem:[#allocation17 + $0x94] ss:$12 sps:$4 sm:$0xff]  }
 0x47e   :  { %3291 = vmatprep.subr.bf16.mxu0 %v3893_v38 }
 0x480   :  { %3288 = vmatmul.mubr.bf16.vlgmr.msra.gmra.mxu0 %v4159_v0  ;;  %v3473_v0 = vld [vmem:[#allocation16 + $0x38] ss:$12 sps:$4 sm:$0xff]  }
 0x481   :  { %3292 = vmatpush3.bf16.msra.mxu0 %v3453_v52  ;;  %3307 = vmatprep.mubr.msk.bf16.mxu0 %vm3894_vm1, %v3893_v38  ;;  %v3525_v52 = vld [vmem:[#allocation14 + $0x150] ss:$12 sps:$4 sm:$0xff]  }
 0x482   :  { %3293 = vmatprep.subr.bf16.mxu0 %v3893_v38 }
 0x485   :  { %3294 = vmatpush3.bf16.msra.mxu0 %v3457_v29  ;;  %v3552_v29 = vld [vmem:[#allocation17 + $0x90] ss:$12 sps:$4 sm:$0xff]  }
 0x486   :  { %3295 = vmatprep.subr.bf16.mxu0 %v3893_v38 }
 0x489   :  { %3296 = vmatpush3.bf16.msra.mxu0 %v3461_v31  ;;  %v3530_v31 = vld [vmem:[#allocation14 + $0x13c] ss:$12 sps:$4 sm:$0xff]  }
 0x48a   :  { %3297 = vmatprep.subr.bf16.mxu0 %v3893_v38 }
 0x48d   :  { %3298 = vmatpush3.bf16.msra.mxu0 %v3465_v30  ;;  %v3528_v30 = vld [vmem:[#allocation14 + $0x138] ss:$12 sps:$4 sm:$0xff]  }
 0x48e   :  { %3299 = vmatprep.subr.bf16.mxu0 %v3893_v38 }
 0x491   :  { %3300 = vmatpush3.bf16.msra.mxu0 %v3469_v32  ;;  %v3533_v32 = vld [vmem:[#allocation14 + $0x124] ss:$12 sps:$4 sm:$0xff]  }
 0x492   :  { %3301 = vmatprep.subr.bf16.mxu0 %v3893_v38 }
 0x495   :  { %3302 = vmatpush3.bf16.msra.mxu0 %v3473_v0  ;;  %v3531_v0 = vld [vmem:[#allocation14 + $0x120] ss:$12 sps:$4 sm:$0xff]  }
 0x496   :  { %3303 = vmatprep.subr.bf16.mxu0 %v3893_v38 }
 0x499   :  { %3304 = vmatpush3.bf16.msra.mxu0 %v3477_v34  ;;  %v3536_v34 = vld [vmem:[#allocation14 + $0x10c] ss:$12 sps:$4 sm:$0xff]  }
 0x49a   :  { %3305 = vmatprep.subr.bf16.mxu0 %v3893_v38 }
 0x49d   :  { %3306 = vmatpush3.bf16.msra.mxu0 %v3481_v16  ;;  %v3537_v16 = vld [vmem:[#allocation14 + $0xf0] ss:$12 sps:$4 sm:$0xff]  }
 0x49e   :  { %3186 = vmatprep.subr.bf16.mxu0 %v3485_v37  ;;  %v3540_v37 = vld [vmem:[#allocation14 + $0xd8] ss:$12 sps:$4 sm:$0xff]  }
 0x540   :  { %v1415_v42 = vpop.f32.mrf.mxu0 }
 0x542   :  { %v3289_v44 = vpop.f32.mrf.mxu0 }
 0x543   :  { %v3557_v44 = vld [vmem:[#allocation17 + $0x214] ss:$12 sps:$4 sm:$0xff]  }
 0x544   :  { %v1418_v46 = vpop.f32.mrf.mxu0 }
 0x545   :  { %v1422_v54 = vpack.c.bf16 %v1418_v46, %v1415_v42  ;;  %v3549_v42 = vld [vmem:[#allocation17 + $0x228] ss:$12 sps:$4 sm:$0xff]  }
 0x546   :  { %v3290_v57 = vpop.f32.mrf.mxu0  ;;  %v3560_v46 = vld [vmem:[#allocation17 + $0x7c] ss:$12 sps:$4 sm:$0xff]  }
 0x547   :  { %1680 = vmatmul.mubr.bf16.vlgmr.msra.gmra.mxu1 %v1422_v54  ;;  %3308 = vmatmul.mubr.bf16.vlgmr.msra.gmra.mxu0 %v1422_v54  ;;  %v3564_v54 = vld [vmem:[#allocation17 + $0x60] ss:$12 sps:$4 sm:$0xff]   ;;  %v3569_v57 = vld [vmem:[#allocation17 + $0x1e4] ss:$12 sps:$4 sm:$0xff]  }
 0x548   :  { %1988 = vmatpush1.bf16.msra.mxu1 %v3482_v47  ;;  %3187 = vmatpush3.bf16.msra.mxu0 %v3486_v53  ;;  %v3555_v47 = vld [vmem:[#allocation17 + $0x210] ss:$12 sps:$4 sm:$0xff]  }
 0x549   :  { %1989 = vmatprep.subr.bf16.mxu1 %v3489_v55  ;;  %3188 = vmatprep.subr.bf16.mxu0 %v3490_v56  ;;  %v3563_v53 = vld [vmem:[#allocation17 + $0x1fc] ss:$12 sps:$4 sm:$0xff]   ;;  %v3566_v55 = vld [vmem:[#allocation17 + $0x64] ss:$12 sps:$4 sm:$0xff]  }
 0x54a   :  { %2062 = vmatprep.mubr.bf16.mxu0 %v1380_v58  ;;  %2019 = vmatprep.mubr.bf16.mxu1 %v1380_v58  ;;  %v3561_v56 = vld [vmem:[#allocation17 + $0x1f8] ss:$12 sps:$4 sm:$0xff]   ;;  %v3567_v58 = vld [vmem:[#allocation17 + $0x1e0] ss:$12 sps:$4 sm:$0xff]  }
 0x54c   :  { %1990 = vmatpush1.bf16.msra.mxu1 %v3487_v62  ;;  %3189 = vmatpush3.bf16.msra.mxu0 %v3491_v63  ;;  %v3572_v62 = vld [vmem:[#allocation17 + $0x4c] ss:$12 sps:$4 sm:$0xff]   ;;  %v3570_v63 = vld [vmem:[#allocation17 + $0x48] ss:$12 sps:$4 sm:$0xff]  }
 0x54d   :  { %1991 = vmatprep.subr.bf16.mxu1 %v3494_v2  ;;  %3190 = vmatprep.subr.bf16.mxu0 %v3495_v3  ;;  %v3575_v2 = vld [vmem:[#allocation17 + $0x1cc] ss:$12 sps:$4 sm:$0xff]   ;;  %v3578_v3 = vld [vmem:[#allocation17 + $0x34] ss:$12 sps:$4 sm:$0xff]  }
 0x550   :  { %1992 = vmatpush1.bf16.msra.mxu1 %v3492_v4  ;;  %3191 = vmatpush3.bf16.msra.mxu0 %v3496_v5  ;;  %v3576_v4 = vld [vmem:[#allocation17 + $0x30] ss:$12 sps:$4 sm:$0xff]   ;;  %v3581_v5 = vld [vmem:[#allocation17 + $0x1b4] ss:$12 sps:$4 sm:$0xff]  }
 0x551   :  { %1993 = vmatprep.subr.bf16.mxu1 %v3499_v8  ;;  %3192 = vmatprep.subr.bf16.mxu0 %v3500_v9  ;;  %v3579_v8 = vld [vmem:[#allocation17 + $0x1b0] ss:$12 sps:$4 sm:$0xff]  }
 0x552   :  { %v3584_v9 = vld [vmem:[#allocation17 + $0x1c] ss:$12 sps:$4 sm:$0xff]  }
 0x554   :  { %1994 = vmatpush1.bf16.msra.mxu1 %v3497_v10  ;;  %3193 = vmatpush3.bf16.msra.mxu0 %v3501_v11  ;;  %v3582_v10 = vld [vmem:[#allocation17 + $0x18] ss:$12 sps:$4 sm:$0xff]   ;;  %v3587_v11 = vld [vmem:[#allocation17 + $0x19c] ss:$12 sps:$4 sm:$0xff]  }
 0x555   :  { %1995 = vmatprep.subr.bf16.mxu1 %v3504_v12  ;;  %3194 = vmatprep.subr.bf16.mxu0 %v3505_v13  ;;  %v3585_v12 = vld [vmem:[#allocation17 + $0x198] ss:$12 sps:$4 sm:$0xff]  }
 0x556   :  { %v3590_v13 = vld [vmem:[#allocation17 + $0x4] ss:$12 sps:$4 sm:$0xff]  }
 0x558   :  { %1996 = vmatpush1.bf16.msra.mxu1 %v3502_v21  ;;  %3195 = vmatpush3.bf16.msra.mxu0 %v3506_v14  ;;  %v3588_v21 = vld [vmem:[#allocation17] ss:$12 sps:$4 sm:$0xff]   ;;  %v3593_v14 = vld [vmem:[#allocation17 + $0x184] ss:$12 sps:$4 sm:$0xff]  }
 0x559   :  { %1997 = vmatprep.subr.bf16.mxu1 %v3509_v17  ;;  %3196 = vmatprep.subr.bf16.mxu0 %v3510_v26  ;;  %v3591_v17 = vld [vmem:[#allocation17 + $0x180] ss:$12 sps:$4 sm:$0xff]   ;;  %v3594_v26 = vld [vmem:[#allocation17 + $0x168] ss:$12 sps:$4 sm:$0xff]  }
 0x55c   :  { %1998 = vmatpush1.bf16.msra.mxu1 %v3507_v18  ;;  %3197 = vmatpush3.bf16.msra.mxu0 %v3511_v19  ;;  %v3596_v18 = vld [vmem:[#allocation17 + $0x16c] ss:$12 sps:$4 sm:$0xff]   ;;  %v3597_v19 = vld [vmem:[#allocation17 + $0x170] ss:$12 sps:$4 sm:$0xff]  }
 0x55d   :  { %1999 = vmatprep.subr.bf16.mxu1 %v3514_v33  ;;  %3198 = vmatprep.subr.bf16.mxu0 %v3515_v20  ;;  %v3599_v33 = vld [vmem:[#allocation17 + $0x150] ss:$12 sps:$4 sm:$0xff]   ;;  %v3601_v20 = vld [vmem:[#allocation17 + $0x154] ss:$12 sps:$4 sm:$0xff]  }
 0x560   :  { %2000 = vmatpush1.bf16.msra.mxu1 %v3512_v1  ;;  %3199 = vmatpush3.bf16.msra.mxu0 %v3516_v22  ;;  %v3604_v1 = vld [vmem:[#allocation17 + $0x138] ss:$12 sps:$4 sm:$0xff]   ;;  %v3606_v22 = vld [vmem:[#allocation17 + $0x13c] ss:$12 sps:$4 sm:$0xff]  }
 0x561   :  { %2001 = vmatprep.subr.bf16.mxu1 %v3519_v43  ;;  %3200 = vmatprep.subr.bf16.mxu0 %v3520_v48  ;;  %v3609_v43 = vld [vmem:[#allocation17 + $0x120] ss:$12 sps:$4 sm:$0xff]   ;;  %v3611_v48 = vld [vmem:[#allocation17 + $0x124] ss:$12 sps:$4 sm:$0xff]  }
 0x564   :  { %2002 = vmatpush1.bf16.msra.mxu1 %v3517_v51  ;;  %3201 = vmatpush3.bf16.msra.mxu0 %v3521_v23  ;;  %v3616_v51 = vld [vmem:[#allocation17 + $0x10c] ss:$12 sps:$4 sm:$0xff]   ;;  %v3614_v23 = vld [vmem:[#allocation17 + $0x108] ss:$12 sps:$4 sm:$0xff]  }
 0x565   :  { %2003 = vmatprep.subr.bf16.mxu1 %v3524_v24  ;;  %2606 = vmatprep.subr.bf16.mxu0 %v3548_v6  ;;  %v3621_v24 = vld [vmem:[#allocation17 + $0xf4] ss:$12 sps:$4 sm:$0xff]   ;;  %v3619_v6 = vld [vmem:[#allocation17 + $0xf0] ss:$12 sps:$4 sm:$0xff]  }
 0x567   :  { %2063 = vmatmul.mubr.bf16.vlgmr.msra.gmra.mxu0 %v1379_v25 }
 0x568   :  { %2004 = vmatpush2.bf16.msra.mxu1 %v3522_v7  ;;  %2607 = vmatpush1.bf16.msra.mxu0 %v3546_v27  ;;  %v3624_v7 = vld [vmem:[#allocation17 + $0xd8] ss:$12 sps:$4 sm:$0xff]  }
 0x569   :  { %2005 = vmatprep.subr.bf16.mxu1 %v3527_v50  ;;  %2608 = vmatprep.subr.bf16.mxu0 %v3554_v28  ;;  %v3631_v27 = vld [vmem:[#allocation17 + $0xc4] ss:$12 sps:$4 sm:$0xff]   ;;  %v3629_v50 = vld [vmem:[#allocation17 + $0xc0] ss:$12 sps:$4 sm:$0xff]  }
 0x56c   :  { %2006 = vmatpush2.bf16.msra.mxu1 %v3525_v52  ;;  %2609 = vmatpush1.bf16.msra.mxu0 %v3552_v29 }
 0x56d   :  { %2007 = vmatprep.subr.bf16.mxu1 %v3530_v31  ;;  %2610 = vmatprep.subr.bf16.mxu0 %v3560_v46 }
 0x570   :  { %2008 = vmatpush2.bf16.msra.mxu1 %v3528_v30  ;;  %2611 = vmatpush1.bf16.msra.mxu0 %v3558_v45  ;;  %v4192_v30 = vsub.s32 2, %v4065_v59 }
 0x571   :  { %2009 = vmatprep.subr.bf16.mxu1 %v3533_v32  ;;  %2612 = vmatprep.subr.bf16.mxu0 %v3566_v55 }
 0x574   :  { %2010 = vmatpush2.bf16.msra.mxu1 %v3531_v0  ;;  %2613 = vmatpush1.bf16.msra.mxu0 %v3564_v54  ;;  %v2071_v0 = vld [vmem:[%s4243_s9] sm:$0x7]  ;;  %v3598_v54 = vld [vmem:[#allocation17 + $0xb0] ss:$12 sps:$4 sm:$0xff]  }
 0x575   :  { %2011 = vmatprep.subr.bf16.mxu1 %v3536_v34  ;;  %2614 = vmatprep.subr.bf16.mxu0 %v3572_v62  ;;  %v3607_v62 = vld [vmem:[#allocation17 + $0x140] ss:$12 sps:$4 sm:$0xff]  }
 0x578   :  { %2012 = vmatpush2.bf16.msra.mxu1 %v3534_v15  ;;  %2615 = vmatpush1.bf16.msra.mxu0 %v3570_v63 }
 0x579   :  { %2013 = vmatprep.subr.bf16.mxu1 %v3539_v35  ;;  %2616 = vmatprep.subr.bf16.mxu0 %v3578_v3  ;;  %v2084_v35 = vrot.slane %v2071_v0, %v4192_v30 }
 0x57c   :  { %2014 = vmatpush2.bf16.msra.mxu1 %v3537_v16  ;;  %2617 = vmatpush1.bf16.msra.mxu0 %v3576_v4  ;;  %v2094_v16 = vld [vmem:[%s4244_s10] sm:$0x7] }
 0x57d   :  { %2015 = vmatprep.subr.bf16.mxu1 %v3542_v36  ;;  %2618 = vmatprep.subr.bf16.mxu0 %v3584_v9  ;;  %v2107_v59 = vrot.slane %v2094_v16, %v4192_v30  ;;  %v3613_v4 = vld [vmem:[#allocation17 + $0x68] ss:$12 sps:$4 sm:$0xff]  }
 0x580   :  { %2016 = vmatpush2.bf16.msra.mxu1 %v3540_v37  ;;  %2619 = vmatpush1.bf16.msra.mxu0 %v3582_v10  ;;  %v3618_v10 = vld [vmem:[#allocation17 + $0x50] ss:$12 sps:$4 sm:$0xff]  }
 0x581   :  { %2017 = vmatprep.subr.bf16.mxu1 %v3545_v39  ;;  %2620 = vmatprep.subr.bf16.mxu0 %v3590_v13 }
 0x584   :  { %2018 = vmatpush2.bf16.msra.mxu1 %v3543_v40  ;;  %2621 = vmatpush1.bf16.msra.mxu0 %v3588_v21  ;;  %v2076_v21 = vrot.slane %v2071_v0, %v4071_v61 }
 0x585   :  { %2649 = vmatprep.subr.bf16.mxu1 %v3551_v41  ;;  %2622 = vmatprep.subr.bf16.mxu0 %v3596_v18  ;;  %v3623_v18 = vld [vmem:[#allocation17 + $0x38] ss:$12 sps:$4 sm:$0xff]  }
 0x587   :  { %2020 = vmatmul.mubr.bf16.vlgmr.msra.gmra.mxu1 %v1379_v25  ;;  %v3626_v25 = vld [vmem:[#allocation17 + $0xdc] ss:$12 sps:$4 sm:$0xff]  }
 0x588   :  { %2650 = vmatpush1.bf16.msra.mxu1 %v3549_v42  ;;  %2681 = vmatprep.mubr.bf16.mxu1 %v3892_v49  ;;  %v3573_v49 = vld [vmem:[#allocation17 + $0x1c8] ss:$12 sps:$4 sm:$0xff]  }
 0x589   :  { %2651 = vmatprep.subr.bf16.mxu1 %v3557_v44  ;;  %2623 = vmatpush2.bf16.msra.mxu0 %v3594_v26 }
 0x58a   :  { %2624 = vmatprep.subr.bf16.mxu0 %v3601_v20 }
 0x58c   :  { %2652 = vmatpush1.bf16.msra.mxu1 %v3555_v47 }
 0x58d   :  { %2653 = vmatprep.subr.bf16.mxu1 %v3563_v53  ;;  %2625 = vmatpush2.bf16.msra.mxu0 %v3599_v33  ;;  %v2103_v33 = vrot.slane %v2094_v16, %v4068_v60 }
 0x58e   :  { %2626 = vmatprep.subr.bf16.mxu0 %v3606_v22 }
 0x590   :  { %2654 = vmatpush1.bf16.msra.mxu1 %v3561_v56  ;;  %v3602_v56 = vld [vmem:[#allocation17 + $0x158] ss:$12 sps:$4 sm:$0xff]  }
 0x591   :  { %2655 = vmatprep.subr.bf16.mxu1 %v3569_v57  ;;  %2627 = vmatpush2.bf16.msra.mxu0 %v3604_v1  ;;  %v3627_v1 = vld [vmem:[#allocation17 + $0xe0] ss:$12 sps:$4 sm:$0xff]  }
 0x592   :  { %2628 = vmatprep.subr.bf16.mxu0 %v3611_v48 }
 0x594   :  { %2656 = vmatpush1.bf16.msra.mxu1 %v3567_v58  ;;  %v3603_v58 = vld [vmem:[#allocation17 + $0x98] ss:$12 sps:$4 sm:$0xff]  }
 0x595   :  { %2657 = vmatprep.subr.bf16.mxu1 %v3575_v2  ;;  %2629 = vmatpush2.bf16.msra.mxu0 %v3609_v43  ;;  %v3608_v2 = vld [vmem:[#allocation17 + $0x80] ss:$12 sps:$4 sm:$0xff]   ;;  %v2099_v43 = vrot.slane %v2094_v16, %v4071_v61  ;;  %v3635_v16 = vld [vmem:[#allocation17 + $0x218] ss:$12 sps:$4 sm:$0xff]  }
 0x596   :  { %2630 = vmatprep.subr.bf16.mxu0 %v3616_v51 }
 0x598   :  { %2658 = vmatpush1.bf16.msra.mxu1 %v3573_v49  ;;  %v3612_v49 = vld [vmem:[#allocation17 + $0x128] ss:$12 sps:$4 sm:$0xff]  }
 0x599   :  { %2659 = vmatprep.subr.bf16.mxu1 %v3581_v5  ;;  %2631 = vmatpush2.bf16.msra.mxu0 %v3614_v23  ;;  %v3617_v5 = vld [vmem:[#allocation17 + $0x110] ss:$12 sps:$4 sm:$0xff]  }
 0x59a   :  { %2632 = vmatprep.subr.bf16.mxu0 %v3621_v24  ;;  %v3628_v24 = vld [vmem:[#allocation17 + $0x20] ss:$12 sps:$4 sm:$0xff]  }
 0x59c   :  { %2660 = vmatpush1.bf16.msra.mxu1 %v3579_v8 }
 0x59d   :  { %2661 = vmatprep.subr.bf16.mxu1 %v3587_v11  ;;  %2633 = vmatpush2.bf16.msra.mxu0 %v3619_v6  ;;  %v2080_v11 = vrot.slane %v2071_v0, %v4068_v60 }
 0x59e   :  { %2634 = vmatprep.subr.bf16.mxu0 %v3626_v25 }
 0x5a0   :  { %2662 = vmatpush1.bf16.msra.mxu1 %v3585_v12  ;;  %v3622_v12 = vld [vmem:[#allocation17 + $0xf8] ss:$12 sps:$4 sm:$0xff]  }
 0x5a1   :  { %2663 = vmatprep.subr.bf16.mxu1 %v3593_v14  ;;  %2635 = vmatpush2.bf16.msra.mxu0 %v3624_v7 }
 0x5a2   :  { %2636 = vmatprep.subr.bf16.mxu0 %v3631_v27  ;;  %v3632_v27 = vld [vmem:[#allocation17 + $0xc8] ss:$12 sps:$4 sm:$0xff]  }
 0x5a4   :  { %2664 = vmatpush1.bf16.msra.mxu1 %v3591_v17 }
 0x5a5   :  { %3208 = vmatprep.subr.bf16.mxu1 %v3597_v19  ;;  %2637 = vmatpush2.bf16.msra.mxu0 %v3629_v50 }
 0x5a6   :  { %3311 = vmatprep.subr.bf16.mxu0 %v3893_v38 }
 0x607   :  { %v1724_v28 = vpop.f32.mrf.mxu0  ;;  %v1681_v57 = vpop.f32.mrf.mxu1 }
 0x609   :  { %v3309_v52 = vpop.f32.mrf.mxu0  ;;  %v1683_v63 = vpop.f32.mrf.mxu1 }
 0x60b   :  { %v1727_v29 = vpop.f32.mrf.mxu0  ;;  %v1685_v3 = vpop.f32.mrf.mxu1 }
 0x60d   :  { %v3310_v31 = vpop.f32.mrf.mxu0  ;;  %v1687_v8 = vpop.f32.mrf.mxu1 }
 0x627   :  { %v3202_v32 = vpop.f32.mrf.mxu0 }
 0x629   :  { %v3203_v34 = vpop.f32.mrf.mxu0 }
 0x62a   :  { %v3204_v15 = vadd.f32 %v3203_v34, %v3202_v32 }
 0x62b   :  { %v3205_v36 = vpop.f32.mrf.mxu0 }
 0x62c   :  { %v2065_v37 = vadd.f32 %v3204_v15, %v1724_v28  ;;  %v3634_v15 = vld [vmem:[#allocation17 + $0x230] ss:$12 sps:$4 sm:$0xff]  }
 0x62d   :  { %v3206_v39 = vpop.f32.mrf.mxu0 }
 0x62e   :  { %v2090_v40 = vmul.f32 %v2084_v35, %v2065_v37  ;;  %v3207_v41 = vadd.f32 %v3206_v39, %v3205_v36  ;;  %v3636_v36 = vld [vmem:[#allocation17 + $0x200] ss:$12 sps:$4 sm:$0xff]   ;;  %v3637_v37 = vld [vmem:[#allocation17 + $0x1e8] ss:$12 sps:$4 sm:$0xff]   ;;  %v3638_v39 = vld [vmem:[#allocation17 + $0x1d0] ss:$12 sps:$4 sm:$0xff]  }
 0x630   :  { %v2068_v42 = vadd.f32 %v3207_v41, %v1727_v29  ;;  %v2113_v44 = vadd.f32 %v2107_v59, %v2090_v40  ;;  %v3633_v29 = vld [vmem:[#allocation17 + $0x8] ss:$12 sps:$4 sm:$0xff]   ;;  %v3639_v40 = vld [vmem:[#allocation17 + $0x1b8] ss:$12 sps:$4 sm:$0xff]  }
 0x631   :  { %v3641_v41 = vld [vmem:[#allocation17 + $0x188] ss:$12 sps:$4 sm:$0xff]  }
 0x632   :  { %v2093_v45 = vmul.f32 %v2084_v35, %v2068_v42  ;;  %v2119_v47 = vmax.f32 %v2113_v44, 0.0  ;;  %v2774_v44 = vld [vmem:[%s4246_s12] sm:$0x7]  ;;  %s3895_s12 = smov [#allocation19]  }
 0x634   :  { %v2116_v46 = vadd.f32 %v2107_v59, %v2093_v45  ;;  %v3640_v59 = vld [vmem:[#allocation17 + $0x1a0] ss:$12 sps:$4 sm:$0xff]  }
 0x636   :  { %v2122_v53 = vmax.f32 %v2116_v46, 0.0  ;;  %v2797_v46 = vld [vmem:[%s4247_s13] sm:$0x7]  ;;  %s2837_s13 = sshll.u32 %s3895_s12, 4  ;;  %s2838_s13 = int_to_ptr.vmem [resolvable:$true] %s2837_s13 }
 0x637   :  { %s3842_s19 = scalar_lea.vmem %s2838_s13, 768  ;;  %p3847_p9 = scmp.lt.s32.totalorder %s2838_s13, %s2838_s13 }
 0x638   :  { %v4202_v55 = vpack.c.bf16 %v2122_v53, %v2119_v47  ;;  %v2779_v47 = vrot.slane %v2774_v44, %v4071_v61  ;;  %p3843_p8 = scmp.ne.s32.totalorder %s2838_s13, %s3842_s19  ;;  %p3848_p10 = scmp.lt.s32.totalorder %s3842_s19, %s3842_s19 }
 0x63a   :  { %2682 = vmatmul.mubr.bf16.vlgmr.msra.gmra.mxu1 %v4202_v55  ;;  %p3849_p11 = por %p3848_p10, %p3847_p9 }
 0x63b   :  { %3209 = vmatpush3.bf16.msra.mxu1 %v3598_v54 }
 0x63c   :  { %3210 = vmatprep.subr.bf16.mxu1 %v3602_v56  ;;  %v2802_v56 = vrot.slane %v2797_v46, %v4071_v61  ;;  %p3850_p12 = pnand %p3849_p11, %p3843_p8 }
 0x63f   :  { %3211 = vmatpush3.bf16.msra.mxu1 %v3603_v58 }
 0x640   :  { %3212 = vmatprep.subr.bf16.mxu1 %v3607_v62 }
 0x643   :  { %3213 = vmatpush3.bf16.msra.mxu1 %v3608_v2 }
 0x644   :  { %3214 = vmatprep.subr.bf16.mxu1 %v3612_v49 }
 0x647   :  { %3215 = vmatpush3.bf16.msra.mxu1 %v3613_v4  ;;  %v2021_v9 = vpop.f32.mrf.mxu1 }
 0x648   :  { %3216 = vmatprep.subr.bf16.mxu1 %v3617_v5  ;;  %v2022_v13 = vadd.f32 %v2021_v9, %v1681_v57 }
 0x649   :  { %v2023_v14 = vpop.f32.mrf.mxu1 }
 0x64a   :  { %v2024_v17 = vadd.f32 %v2023_v14, %v1683_v63  ;;  %v2088_v22 = vmul.f32 %v2076_v21, %v2022_v13  ;;  %v2806_v63 = vrot.slane %v2797_v46, %v4068_v60 }
 0x64b   :  { %3217 = vmatpush3.bf16.msra.mxu1 %v3618_v10  ;;  %v2025_v26 = vpop.f32.mrf.mxu1 }
 0x64c   :  { %v2089_v19 = vmul.f32 %v2080_v11, %v2024_v17  ;;  %v2026_v20 = vadd.f32 %v2025_v26, %v1685_v3  ;;  %3218 = vmatprep.subr.bf16.mxu1 %v3622_v12  ;;  %v2111_v50 = vadd.f32 %v2099_v43, %v2088_v22 }
 0x64d   :  { %v2027_v48 = vpop.f32.mrf.mxu1 }
 0x64e   :  { %v2091_v51 = vmul.f32 %v2076_v21, %v2026_v20  ;;  %v2028_v23 = vadd.f32 %v2027_v48, %v1687_v8  ;;  %v2112_v6 = vadd.f32 %v2103_v33, %v2089_v19  ;;  %v2117_v0 = vmax.f32 %v2111_v50, 0.0 }
 0x64f   :  { %3219 = vmatpush3.bf16.msra.mxu1 %v3623_v18  ;;  %v2787_v20 = vrot.slane %v2774_v44, %v4192_v30  ;;  %v2810_v48 = vrot.slane %v2797_v46, %v4192_v30 }
 0x650   :  { %v2114_v25 = vadd.f32 %v2099_v43, %v2091_v51  ;;  %v2092_v7 = vmul.f32 %v2080_v11, %v2028_v23  ;;  %3220 = vmatprep.subr.bf16.mxu1 %v3627_v1  ;;  %v2118_v31 = vmax.f32 %v2112_v6, 0.0 }
 0x652   :  { %v2115_v28 = vadd.f32 %v2103_v33, %v2092_v7  ;;  %v2120_v52 = vmax.f32 %v2114_v25, 0.0 }
 0x653   :  { %3221 = vmatpush3.bf16.msra.mxu1 %v3628_v24 }
 0x654   :  { %v2121_v32 = vmax.f32 %v2115_v28, 0.0  ;;  %3222 = vmatprep.subr.bf16.mxu1 %v3632_v27  ;;  %v2123_v35 = vpack.c.bf16 %v2120_v52, %v2117_v0 }
 0x656   :  { %v2124_v34 = vpack.c.bf16 %v2121_v32, %v2118_v31 }
 0x657   :  { %3223 = vmatpush3.bf16.msra.mxu1 %v3633_v29 }
 0x658   :  { %2638 = vmatprep.mubr.bf16.mxu0 %v2124_v34  ;;  %2724 = vmatprep.mubr.bf16.mxu1 %v2124_v34 }
 0x659   :  { %2639 = vmatmul.mubr.bf16.vlgmr.msra.gmra.mxu0 %v2123_v35 }
 0x65a   :  { %2725 = vmatmul.mubr.bf16.vlgmr.msra.gmra.mxu1 %v2123_v35  ;;  %3312 = vmatpush3.bf16.msra.mxu0 %v3634_v15 }
 0x65b   :  { %3313 = vmatprep.subr.bf16.mxu0 %v3893_v38  ;;  %3327 = vmatprep.mubr.msk.bf16.mxu0 %vm3894_vm1, %v3893_v38 }
 0x65e   :  { %3314 = vmatpush3.bf16.msra.mxu0 %v3635_v16 }
 0x65f   :  { %3315 = vmatprep.subr.bf16.mxu0 %v3893_v38 }
 0x662   :  { %3316 = vmatpush3.bf16.msra.mxu0 %v3636_v36 }
 0x663   :  { %3317 = vmatprep.subr.bf16.mxu0 %v3893_v38 }
 0x666   :  { %3318 = vmatpush3.bf16.msra.mxu0 %v3637_v37 }
 0x667   :  { %3319 = vmatprep.subr.bf16.mxu0 %v3893_v38 }
 0x66a   :  { %3320 = vmatpush3.bf16.msra.mxu0 %v3638_v39 }
 0x66b   :  { %3321 = vmatprep.subr.bf16.mxu0 %v3893_v38 }
 0x66e   :  { %3322 = vmatpush3.bf16.msra.mxu0 %v3639_v40 }
 0x66f   :  { %3323 = vmatprep.subr.bf16.mxu0 %v3893_v38 }
 0x672   :  { %3324 = vmatpush3.bf16.msra.mxu0 %v3640_v59 }
 0x673   :  { %3325 = vmatprep.subr.bf16.mxu0 %v3893_v38  ;;  %v2783_v38 = vrot.slane %v2774_v44, %v4068_v60 }
 0x676   :  { %3326 = vmatpush3.bf16.msra.mxu0 %v3641_v41 }
 0x679   :  { %3328 = vmatmul.mubr.bf16.vlgmr.msra.gmra.mxu0 %v4202_v55 }
 0x6fa   :  { %v2683_v42 = vpop.f32.mrf.mxu1 }
 0x6fc   :  { %v2685_v45 = vpop.f32.mrf.mxu1 }
 0x6fe   :  { %v2687_v57 = vpop.f32.mrf.mxu1 }
 0x700   :  { %v2689_v5 = vpop.f32.mrf.mxu1 }
 0x719   :  { %v2640_v53 = vpop.f32.mrf.mxu0 }
 0x71a   :  { %v2684_v54 = vadd.f32 %v2683_v42, %v2640_v53  ;;  %v3224_v60 = vpop.f32.mrf.mxu1 }
 0x71b   :  { %v2642_v55 = vpop.f32.mrf.mxu0 }
 0x71c   :  { %v2791_v58 = vmul.f32 %v2779_v47, %v2684_v54  ;;  %v2686_v62 = vadd.f32 %v2685_v45, %v2642_v55  ;;  %v3225_v18 = vpop.f32.mrf.mxu1 }
 0x71d   :  { %v2644_v2 = vpop.f32.mrf.mxu0  ;;  %v3226_v33 = vadd.f32 %v3225_v18, %v3224_v60 }
 0x71e   :  { %v2814_v49 = vadd.f32 %v2802_v56, %v2791_v58  ;;  %v2792_v3 = vmul.f32 %v2783_v38, %v2686_v62  ;;  %v2688_v4 = vadd.f32 %v2687_v57, %v2644_v2  ;;  %v3227_v19 = vpop.f32.mrf.mxu1 }
 0x71f   :  { %v2646_v8 = vpop.f32.mrf.mxu0 }
 0x720   :  { %v2820_v9 = vmax.f32 %v2814_v49, 0.0  ;;  %v2815_v10 = vadd.f32 %v2806_v63, %v2792_v3  ;;  %v2794_v11 = vmul.f32 %v2779_v47, %v2688_v4  ;;  %v2690_v12 = vadd.f32 %v2689_v5, %v2646_v8  ;;  %v3228_v1 = vpop.f32.mrf.mxu1 }
 0x721   :  { %v3229_v23 = vadd.f32 %v3228_v1, %v3227_v19 }
 0x722   :  { %2826 = vst [vmem:[#allocation19] sm:$0xff] %v2820_v9  ;;  %v2821_v61 = vmax.f32 %v2815_v10, 0.0  ;;  %v2817_v13 = vadd.f32 %v2802_v56, %v2794_v11  ;;  %v2795_v21 = vmul.f32 %v2783_v38, %v2690_v12 }
 0x724   :  { %2827 = vst [vmem:[#allocation19 + $0x8] sm:$0xff] %v2821_v61  ;;  %v2823_v14 = vmax.f32 %v2817_v13, 0.0  ;;  %v2818_v17 = vadd.f32 %v2806_v63, %v2795_v21 }
 0x726   :  { %2829 = vst [vmem:[#allocation19 + $0x18] sm:$0xff] %v2823_v14  ;;  %v2824_v26 = vmax.f32 %v2818_v17, 0.0 }
 0x728   :  { %2830 = vst [vmem:[#allocation19 + $0x20] sm:$0xff] %v2824_v26 }
 0x739   :  { %v2767_v22 = vpop.f32.mrf.mxu0 }
 0x73a   :  { %v2768_v43 = vadd.f32 %v3226_v33, %v2767_v22 }
 0x73b   :  { %v3329_v51 = vpop.f32.mrf.mxu0 }
 0x73c   :  { %v2793_v24 = vmul.f32 %v2787_v20, %v2768_v43 }
 0x73d   :  { %v2770_v6 = vpop.f32.mrf.mxu0 }
 0x73e   :  { %v2816_v25 = vadd.f32 %v2810_v48, %v2793_v24  ;;  %v2771_v7 = vadd.f32 %v3229_v23, %v2770_v6 }
 0x73f   :  { %v3330_v27 = vpop.f32.mrf.mxu0 }
 0x740   :  { %v2822_v50 = vmax.f32 %v2816_v25, 0.0  ;;  %v2796_v28 = vmul.f32 %v2787_v20, %v2771_v7 }
 0x742   :  { %2828 = vst [vmem:[#allocation19 + $0x10] sm:$0xff] %v2822_v50  ;;  %v2819_v52 = vadd.f32 %v2810_v48, %v2796_v28 }
 0x744   :  { %v2825_v29 = vmax.f32 %v2819_v52, 0.0 }
 0x746   :  { %2831 = vst [vmem:[#allocation19 + $0x28] sm:$0xff] %v2825_v29 }
 0x747   :  { %3853 = shalt.err (!%p3850_p12)
}
 0x748   :  { %s3896_s21 = smov 384   ;;  %s3897_s22 = smov 24  }
 0x749   :  { %2843 = dma.vmem_to_hbm [thread:$0]  %s2838_s13, 768, %s4248_s14, [#allocation4], %s3896_s21, %s3896_s21, %s3897_s22  }
 0x74a   :  { %3874 = dma.done.wait [#allocation4], 768  }
 0x74b   :  { %3875 = vsyncadd [#allocation4], 4294966528 }
 0x74c   :  { %2847 = vsyncpa [#allocation3], 1 }
 0x74d   :  { %2848 = vsyncpa [#allocation6], 1 }
 0x74e   :  { %2849 = vsyncpa [#allocation9], 1 }
 0x74f   :  { %2850 = vsyncpa [#allocation12], 1 }
 0x750   :  { %2851 = vsyncpa [#allocation15], 1 }
 0x751   :  { %2852 = vsyncpa [#allocation18], 1 }
 0x752   :  { %2853 = vsyncpa [#allocation4], 1 }

</bundles_post_ra>
